<compile_context>
chip_gen: v5e
topology: v5e:2x2
jax: 0.10.0
libtpu: 0.0.40
codegen_flags: <defaults>
</compile_context>

<pallas_src>
import jax
import jax.numpy as jnp
from jax.experimental import pallas as pl
from jax.experimental.pallas import tpu as pltpu


_HC = 256  # hidden-chunk width (multiple of 128); 1024 hidden -> 4 chunks


def classifier3_kernel(x_ref, w1_ref, b1_ref, w2_ref, b2_ref, o_ref):
    # x_ref:  (TB, IN)       f32   (cast to bf16 here, on the VPU)
    # w1_ref: (IN, H)        bf16  b1_ref: (1, H)        f32
    # w2_ref: (H, OUT_PAD)   bf16  b2_ref: (1, OUT_PAD)  f32 (-1e30 in padding)
    # o_ref:  (TB, OUT_PAD)  f32
    x = x_ref[...].astype(jnp.bfloat16)

    tb = x_ref.shape[0]
    h_total = w1_ref.shape[1]
    out_pad = o_ref.shape[1]
    hc = _HC if (h_total % _HC == 0) else h_total
    n_chunks = h_total // hc

    # Fused over the hidden axis: per 256-wide chunk compute
    #   h_c = relu(x @ W1[:, c] + b1[c])          (f32)
    #   logits += bf16(h_c) @ W2[c, :]            (f32 accumulate)
    # so the full (TB, H) f32 hidden never exists.  Static trip count ->
    # straight-line code; chunk starts are static multiples of 128 so the
    # weight-ref slices are zero-cost views.
    logits = jnp.zeros((tb, out_pad), jnp.float32)
    for c in range(n_chunks):
        s = c * hc
        h = jnp.dot(x, w1_ref[:, s:s + hc],
                    preferred_element_type=jnp.float32) + b1_ref[:, s:s + hc]
        h = jnp.maximum(h, 0.0)
        logits = logits + jnp.dot(h.astype(jnp.bfloat16), w2_ref[s:s + hc, :],
                                  preferred_element_type=jnp.float32)
    logits = logits + b2_ref[...]

    # Numerically-stable softmax over the last axis.  Padded columns carry
    # logits ~ -1e30 (f32 path) so they contribute 0 to the denominator.
    m = jnp.max(logits, axis=-1, keepdims=True)
    e = jnp.exp(logits - m)
    o_ref[...] = e / jnp.sum(e, axis=-1, keepdims=True)


def _choose_tb(B, cap):
    """Batch tile: prefer a tile that divides B exactly (no x padding)."""
    cap = max(8, min(cap, B))
    if cap == B:
        return B                              # single grid step
    for t in range(cap, 7, -1):
        if B % t == 0 and t % 8 == 0:
            return t                          # exact tiling, no padding
    return max(8, (cap // 8) * 8)             # fallback: pad the batch


def classifier3_forward(x, w1, b1, w2, b2, *, tb=1024):
    """x: (B, IN) f32; w1: (IN, H); b1: (1, H); w2: (H, OUT); b2: (1, OUT).

    Weights are in (in, out) layout (transposed vs. nn.Linear storage).
    Returns (B, OUT) f32 softmax probabilities.
    """
    B, IN = x.shape
    H = w1.shape[1]
    OUT = w2.shape[1]

    # Lane-dense output: pad the output-feature axis to exactly one 128-wide
    # tile (padding wider only adds HBM writeback / exp work for nothing).
    OUT_PAD = pl.cdiv(max(OUT, 128), 128) * 128

    TB = _choose_tb(B, tb)
    Bp = pl.cdiv(B, TB) * TB
    x_in = x if Bp == B else jnp.pad(x, ((0, Bp - B), (0, 0)))

    # One-time weight prep (tiny: <= ~0.3 MiB): bf16 MXU weights, padded W2/b2.
    w1_bf = w1.astype(jnp.bfloat16)
    w2_bf = jnp.zeros((H, OUT_PAD), jnp.bfloat16).at[:, :OUT].set(
        w2.astype(jnp.bfloat16))
    b1_f = b1.reshape(1, H).astype(jnp.float32)
    b2_p = jnp.full((1, OUT_PAD), -1e30, jnp.float32).at[:, :OUT].set(
        b2.reshape(1, OUT).astype(jnp.float32))

    # Weight BlockSpecs use constant index_maps -> VMEM-resident across steps.
    # TODO(synk): single-buffer the constant-index weight blocks
    # (pipeline_mode=pl.Buffered(1)) once verified on the target jax version;
    # saves ~325 KiB of VMEM headroom.
    out_padded = pl.pallas_call(
        classifier3_kernel,
        out_shape=jax.ShapeDtypeStruct((Bp, OUT_PAD), jnp.float32),
        grid_spec=pl.GridSpec(
            grid=(Bp // TB,),
            in_specs=[
                pl.BlockSpec((TB, IN), lambda i: (i, 0)),       # x tile (f32)
                pl.BlockSpec((IN, H), lambda i: (0, 0)),        # W1 (resident)
                pl.BlockSpec((1, H), lambda i: (0, 0)),         # b1 (resident)
                pl.BlockSpec((H, OUT_PAD), lambda i: (0, 0)),   # W2 (resident)
                pl.BlockSpec((1, OUT_PAD), lambda i: (0, 0)),   # b2 (resident)
            ],
            out_specs=pl.BlockSpec((TB, OUT_PAD), lambda i: (i, 0)),
        ),
        compiler_params=pltpu.CompilerParams(
            dimension_semantics=("parallel",),   # shards batch over v7x's 2 TCs
        ),
    )(x_in, w1_bf, b1_f, w2_bf, b2_p)

    if Bp == B:
        return out_padded[:, :OUT]
    return out_padded[:B, :OUT]


def init_linear_params(key, fan_in, fan_out):
    """PyTorch nn.Linear-style uniform(-1/sqrt(fan_in), 1/sqrt(fan_in)) init.
    Weight returned in (in, out) layout; bias as (1, out)."""
    kw, kb = jax.random.split(key)
    bound = 1.0 / jnp.sqrt(jnp.float32(fan_in))
    w = jax.random.uniform(kw, (fan_in, fan_out), jnp.float32, -bound, bound)
    b = jax.random.uniform(kb, (1, fan_out), jnp.float32, -bound, bound)
    return w, b


if __name__ == "__main__":
    # Small shapes consistent with the module: hidden width is fixed at 1024
    # by Classifier3; inFeatures=32, outFeatures=16, batch=128.
    B, IN, H, OUT = 128, 32, 1024, 16

    key = jax.random.PRNGKey(0)
    kx, k1, k2 = jax.random.split(key, 3)

    x = jax.random.normal(kx, (B, IN), jnp.float32)
    w1, b1 = init_linear_params(k1, IN, H)
    w2, b2 = init_linear_params(k2, H, OUT)

    # tb=64 -> two grid steps: exercises batch tiling + resident weights
    # (and keeps an even step count for v7x's 2 TensorCores).
    out = classifier3_forward(x, w1, b1, w2, b2, tb=64)
    out = jax.block_until_ready(out)

    # Reference mirroring kernel precision (bf16 MXU inputs, f32 accumulate).
    h_ref = jnp.maximum(
        jnp.dot(x.astype(jnp.bfloat16), w1.astype(jnp.bfloat16),
                preferred_element_type=jnp.float32) + b1, 0.0)
    logits_ref = jnp.dot(h_ref.astype(jnp.bfloat16), w2.astype(jnp.bfloat16),
                         preferred_element_type=jnp.float32) + b2
    ref = jax.nn.softmax(logits_ref, axis=-1)

    assert out.shape == (B, OUT)
    assert jnp.allclose(out, ref, atol=1e-2, rtol=1e-2)
    assert jnp.allclose(jnp.sum(out, axis=-1), 1.0, atol=1e-3)

    print("KERNEL_OK")
</pallas_src>

<mosaic_0001>
module attributes {stable_mosaic.version = 11 : i64} {
  func.func @classifier3_kernel(%arg0: i32, %arg1: memref<64x32xf32, #tpu.memory_space<vmem>>, %arg2: memref<32x1024xbf16, #tpu.memory_space<vmem>>, %arg3: memref<1x1024xf32, #tpu.memory_space<vmem>>, %arg4: memref<1024x128xbf16, #tpu.memory_space<vmem>>, %arg5: memref<1x128xf32, #tpu.memory_space<vmem>>, %arg6: memref<64x128xf32, #tpu.memory_space<vmem>>) attributes {dimension_semantics = [#tpu.dimension_semantics<parallel>], iteration_bounds = array<i64: 2>, scalar_prefetch = 0 : i64, scratch_operands = 0 : i64, tpu.core_type = #tpu.core_type<tc>, window_params = [{transform_indices = @transform_0, window_bounds = array<i64: 64, 32>}, {pipeline_mode = #tpu.pipeline_mode<synchronous>, transform_indices = @transform_1, window_bounds = array<i64: 32, 1024>}, {pipeline_mode = #tpu.pipeline_mode<synchronous>, transform_indices = @transform_2, window_bounds = array<i64: 1, 1024>}, {pipeline_mode = #tpu.pipeline_mode<synchronous>, transform_indices = @transform_3, window_bounds = array<i64: 1024, 128>}, {pipeline_mode = #tpu.pipeline_mode<synchronous>, transform_indices = @transform_4, window_bounds = array<i64: 1, 128>}, {transform_indices = @transform_5, window_bounds = array<i64: 64, 128>}]} {
    %c0 = arith.constant 0 : index
    %c0_0 = arith.constant 0 : index
    %0 = vector.load %arg1[%c0, %c0_0] : memref<64x32xf32, #tpu.memory_space<vmem>>, vector<64x32xf32>
    %1 = arith.truncf %0 : vector<64x32xf32> to vector<64x32xbf16>
    %cst = arith.constant 0.000000e+00 : f32
    %2 = vector.broadcast %cst : f32 to vector<64x128xf32>
    %c0_1 = arith.constant 0 : index
    %c0_2 = arith.constant 0 : index
    %3 = vector.load %arg2[%c0_1, %c0_2] : memref<32x1024xbf16, #tpu.memory_space<vmem>>, vector<32x256xbf16>
    %cst_3 = arith.constant dense<0.000000e+00> : vector<64x256xf32>
    %4 = tpu.matmul %1, %3, %cst_3 {dimension_numbers = #tpu.dot_dimension_numbers<[1], [0], [0], [1], [0, 0, 1, 1], [], []>} : vector<64x32xbf16>, vector<32x256xbf16>, vector<64x256xf32> -> vector<64x256xf32>
    %c0_4 = arith.constant 0 : index
    %c0_5 = arith.constant 0 : index
    %5 = vector.load %arg3[%c0_4, %c0_5] : memref<1x1024xf32, #tpu.memory_space<vmem>>, vector<1x256xf32>
    %6 = vector.broadcast %5 : vector<1x256xf32> to vector<64x256xf32>
    %7 = arith.addf %4, %6 : vector<64x256xf32>
    %cst_6 = arith.constant 0.000000e+00 : f32
    %8 = vector.broadcast %cst_6 : f32 to vector<64x256xf32>
    %9 = arith.maximumf %7, %8 : vector<64x256xf32>
    %10 = arith.truncf %9 : vector<64x256xf32> to vector<64x256xbf16>
    %c0_7 = arith.constant 0 : index
    %c0_8 = arith.constant 0 : index
    %11 = vector.load %arg4[%c0_7, %c0_8] : memref<1024x128xbf16, #tpu.memory_space<vmem>>, vector<256x128xbf16>
    %cst_9 = arith.constant dense<0.000000e+00> : vector<64x128xf32>
    %12 = tpu.matmul %10, %11, %cst_9 {dimension_numbers = #tpu.dot_dimension_numbers<[1], [0], [0], [1], [0, 0, 1, 1], [], []>} : vector<64x256xbf16>, vector<256x128xbf16>, vector<64x128xf32> -> vector<64x128xf32>
    %13 = arith.addf %2, %12 : vector<64x128xf32>
    %c0_10 = arith.constant 0 : index
    %c256 = arith.constant 256 : index
    %14 = vector.load %arg2[%c0_10, %c256] : memref<32x1024xbf16, #tpu.memory_space<vmem>>, vector<32x256xbf16>
    %cst_11 = arith.constant dense<0.000000e+00> : vector<64x256xf32>
    %15 = tpu.matmul %1, %14, %cst_11 {dimension_numbers = #tpu.dot_dimension_numbers<[1], [0], [0], [1], [0, 0, 1, 1], [], []>} : vector<64x32xbf16>, vector<32x256xbf16>, vector<64x256xf32> -> vector<64x256xf32>
    %c0_12 = arith.constant 0 : index
    %c256_13 = arith.constant 256 : index
    %16 = vector.load %arg3[%c0_12, %c256_13] : memref<1x1024xf32, #tpu.memory_space<vmem>>, vector<1x256xf32>
    %17 = vector.broadcast %16 : vector<1x256xf32> to vector<64x256xf32>
    %18 = arith.addf %15, %17 : vector<64x256xf32>
    %cst_14 = arith.constant 0.000000e+00 : f32
    %19 = vector.broadcast %cst_14 : f32 to vector<64x256xf32>
    %20 = arith.maximumf %18, %19 : vector<64x256xf32>
    %21 = arith.truncf %20 : vector<64x256xf32> to vector<64x256xbf16>
    %c256_15 = arith.constant 256 : index
    %c0_16 = arith.constant 0 : index
    %22 = vector.load %arg4[%c256_15, %c0_16] : memref<1024x128xbf16, #tpu.memory_space<vmem>>, vector<256x128xbf16>
    %cst_17 = arith.constant dense<0.000000e+00> : vector<64x128xf32>
    %23 = tpu.matmul %21, %22, %cst_17 {dimension_numbers = #tpu.dot_dimension_numbers<[1], [0], [0], [1], [0, 0, 1, 1], [], []>} : vector<64x256xbf16>, vector<256x128xbf16>, vector<64x128xf32> -> vector<64x128xf32>
    %24 = arith.addf %13, %23 : vector<64x128xf32>
    %c0_18 = arith.constant 0 : index
    %c512 = arith.constant 512 : index
    %25 = vector.load %arg2[%c0_18, %c512] : memref<32x1024xbf16, #tpu.memory_space<vmem>>, vector<32x256xbf16>
    %cst_19 = arith.constant dense<0.000000e+00> : vector<64x256xf32>
    %26 = tpu.matmul %1, %25, %cst_19 {dimension_numbers = #tpu.dot_dimension_numbers<[1], [0], [0], [1], [0, 0, 1, 1], [], []>} : vector<64x32xbf16>, vector<32x256xbf16>, vector<64x256xf32> -> vector<64x256xf32>
    %c0_20 = arith.constant 0 : index
    %c512_21 = arith.constant 512 : index
    %27 = vector.load %arg3[%c0_20, %c512_21] : memref<1x1024xf32, #tpu.memory_space<vmem>>, vector<1x256xf32>
    %28 = vector.broadcast %27 : vector<1x256xf32> to vector<64x256xf32>
    %29 = arith.addf %26, %28 : vector<64x256xf32>
    %cst_22 = arith.constant 0.000000e+00 : f32
    %30 = vector.broadcast %cst_22 : f32 to vector<64x256xf32>
    %31 = arith.maximumf %29, %30 : vector<64x256xf32>
    %32 = arith.truncf %31 : vector<64x256xf32> to vector<64x256xbf16>
    %c512_23 = arith.constant 512 : index
    %c0_24 = arith.constant 0 : index
    %33 = vector.load %arg4[%c512_23, %c0_24] : memref<1024x128xbf16, #tpu.memory_space<vmem>>, vector<256x128xbf16>
    %cst_25 = arith.constant dense<0.000000e+00> : vector<64x128xf32>
    %34 = tpu.matmul %32, %33, %cst_25 {dimension_numbers = #tpu.dot_dimension_numbers<[1], [0], [0], [1], [0, 0, 1, 1], [], []>} : vector<64x256xbf16>, vector<256x128xbf16>, vector<64x128xf32> -> vector<64x128xf32>
    %35 = arith.addf %24, %34 : vector<64x128xf32>
    %c0_26 = arith.constant 0 : index
    %c768 = arith.constant 768 : index
    %36 = vector.load %arg2[%c0_26, %c768] : memref<32x1024xbf16, #tpu.memory_space<vmem>>, vector<32x256xbf16>
    %cst_27 = arith.constant dense<0.000000e+00> : vector<64x256xf32>
    %37 = tpu.matmul %1, %36, %cst_27 {dimension_numbers = #tpu.dot_dimension_numbers<[1], [0], [0], [1], [0, 0, 1, 1], [], []>} : vector<64x32xbf16>, vector<32x256xbf16>, vector<64x256xf32> -> vector<64x256xf32>
    %c0_28 = arith.constant 0 : index
    %c768_29 = arith.constant 768 : index
    %38 = vector.load %arg3[%c0_28, %c768_29] : memref<1x1024xf32, #tpu.memory_space<vmem>>, vector<1x256xf32>
    %39 = vector.broadcast %38 : vector<1x256xf32> to vector<64x256xf32>
    %40 = arith.addf %37, %39 : vector<64x256xf32>
    %cst_30 = arith.constant 0.000000e+00 : f32
    %41 = vector.broadcast %cst_30 : f32 to vector<64x256xf32>
    %42 = arith.maximumf %40, %41 : vector<64x256xf32>
    %43 = arith.truncf %42 : vector<64x256xf32> to vector<64x256xbf16>
    %c768_31 = arith.constant 768 : index
    %c0_32 = arith.constant 0 : index
    %44 = vector.load %arg4[%c768_31, %c0_32] : memref<1024x128xbf16, #tpu.memory_space<vmem>>, vector<256x128xbf16>
    %cst_33 = arith.constant dense<0.000000e+00> : vector<64x128xf32>
    %45 = tpu.matmul %43, %44, %cst_33 {dimension_numbers = #tpu.dot_dimension_numbers<[1], [0], [0], [1], [0, 0, 1, 1], [], []>} : vector<64x256xbf16>, vector<256x128xbf16>, vector<64x128xf32> -> vector<64x128xf32>
    %46 = arith.addf %35, %45 : vector<64x128xf32>
    %c0_34 = arith.constant 0 : index
    %c0_35 = arith.constant 0 : index
    %47 = vector.load %arg5[%c0_34, %c0_35] : memref<1x128xf32, #tpu.memory_space<vmem>>, vector<1x128xf32>
    %48 = vector.broadcast %47 : vector<1x128xf32> to vector<64x128xf32>
    %49 = arith.addf %46, %48 : vector<64x128xf32>
    %cst_36 = arith.constant dense<0xFF800000> : vector<64xf32>
    %50 = vector.multi_reduction <maximumf>, %49, %cst_36 [1] : vector<64x128xf32> to vector<64xf32>
    %51 = vector.shape_cast %50 : vector<64xf32> to vector<64x1xf32>
    %52 = vector.broadcast %51 : vector<64x1xf32> to vector<64x128xf32>
    %53 = arith.subf %49, %52 : vector<64x128xf32>
    %54 = math.exp %53 : vector<64x128xf32>
    %cst_37 = arith.constant dense<0.000000e+00> : vector<64xf32>
    %55 = vector.multi_reduction <add>, %54, %cst_37 [1] : vector<64x128xf32> to vector<64xf32>
    %56 = vector.shape_cast %55 : vector<64xf32> to vector<64x1xf32>
    %57 = vector.broadcast %56 : vector<64x1xf32> to vector<64x128xf32>
    %58 = arith.divf %54, %57 : vector<64x128xf32>
    %c0_38 = arith.constant 0 : index
    %c0_39 = arith.constant 0 : index
    %59 = vector.load %arg6[%c0_38, %c0_39] : memref<64x128xf32, #tpu.memory_space<vmem>>, vector<64x128xf32>
    tpu.vector_store %arg6[%c0_38, %c0_39], %58 {strides = array<i32>} : memref<64x128xf32, #tpu.memory_space<vmem>>, vector<64x128xf32>,
    return
  }
  func.func @transform_0(%arg0: i32) -> (i32, i32) {
    %c0_i32 = arith.constant 0 : i32
    %c0_i32_0 = arith.constant 0 : i32
    return %arg0, %c0_i32 : i32, i32
  }
  func.func @transform_1(%arg0: i32) -> (i32, i32) {
    %c0_i32 = arith.constant 0 : i32
    %c0_i32_0 = arith.constant 0 : i32
    %c0_i32_1 = arith.constant 0 : i32
    return %c0_i32, %c0_i32_0 : i32, i32
  }
  func.func @transform_2(%arg0: i32) -> (i32, i32) {
    %c0_i32 = arith.constant 0 : i32
    %c0_i32_0 = arith.constant 0 : i32
    %c0_i32_1 = arith.constant 0 : i32
    return %c0_i32, %c0_i32_0 : i32, i32
  }
  func.func @transform_3(%arg0: i32) -> (i32, i32) {
    %c0_i32 = arith.constant 0 : i32
    %c0_i32_0 = arith.constant 0 : i32
    %c0_i32_1 = arith.constant 0 : i32
    return %c0_i32, %c0_i32_0 : i32, i32
  }
  func.func @transform_4(%arg0: i32) -> (i32, i32) {
    %c0_i32 = arith.constant 0 : i32
    %c0_i32_0 = arith.constant 0 : i32
    %c0_i32_1 = arith.constant 0 : i32
    return %c0_i32, %c0_i32_0 : i32, i32
  }
  func.func @transform_5(%arg0: i32) -> (i32, i32) {
    %c0_i32 = arith.constant 0 : i32
    %c0_i32_0 = arith.constant 0 : i32
    return %arg0, %c0_i32 : i32, i32
  }
}

</mosaic_0001>

<bundles_post_ra>
// kernel: tpu_custom_call.1
= control target key start
LH: loop header
LB: loop body
LE: loop exit
PB: predicated region body
PF: predicated region fallthrough
CT: control target
= control target key end

     0   :  { %10 = vsyncpa [#allocation3], 0  ;;  %s2854_s0 = inlined_call_operand.vmem [shape: f32[128,32], index: 0, kind: input, shape index: {}]   ;;  %s2855_s1 = inlined_call_operand.vmem [shape: bf16[32,1024], index: 1, kind: input, shape index: {}]   ;;  %s2856_s2 = inlined_call_operand.vmem [shape: f32[1,1024], index: 2, kind: input, shape index: {}]   ;;  %s2857_s3 = inlined_call_operand.hbm [shape: bf16[1024,128], index: 3, kind: input, shape index: {}]   ;;  %s2858_s4 = inlined_call_operand.vmem [shape: f32[1,128], index: 4, kind: input, shape index: {}]   ;;  %s2859_s5 = inlined_call_operand.hbm [shape: f32[128,128], index: 5, kind: output, shape index: {}]  }
   0x1   :  { %11 = vsyncpa [#allocation4], 0 }
   0x2   :  { %13 = vsyncpa [#allocation4 + $0x1], 0  ;;  %s2430_s18 = smov 0   ;;  %s2432_s19 = smov 0  }
   0x3   :  { %s2434_s20 = smov 0   ;;  %s2436_s21 = smov 0  }
   0x4 LB: > { %s2451_s22 = sadd.s32 4294967295, %s2393_s21   ;;  %s1763_s23 = sadd.s32 4294967294, %s2393_s21   ;;  %s2393_s21 = sphi %s2436_s21, %s2865_s21   ;;  %s2389_s20 = sphi %s2434_s20, %s2864_s20   ;;  %s2385_s19 = sphi %s2432_s19, %s2863_s19   ;;  %s2381_s18 = sphi %s2430_s18, %s2862_s18  }
   0x5   : > { %s2455_s24 = sadd.s32 1, %s2393_s21   ;;  %s136_s25 = sadd.s32 1, %s2389_s20 }
   0x6   : > { %s133_s26 = ssub.s32 %s2393_s21, %s2455_s24  ;;  %p146_p0 = scmp.ne.s32.totalorder %s2389_s20, %s2385_s19 }
   0x7   : > { %p134_p1 = scmp.eq.s32.totalorder %s133_s26, 0  ;;  %p147_p2 = scmp.eq.s32.totalorder %s2451_s22, 1 }
   0x8   : > { %p152_p3 = scmp.ne.s32.totalorder %s2385_s19, %s2381_s18  ;;  %p153_p4 = scmp.eq.s32.totalorder %s1763_s23, 1 }
   0x9   : > { %s2466_s27 = scalar_select %p134_p1, %s2389_s20, %s136_s25  }
   0xa   : > { %p2468_p5 = por %p147_p2, %p146_p0  ;;  %p2472_p6 = por %p153_p4, %p152_p3 }
   0xb   : > { %p1764_p7 = scmp.ge.s32.totalorder %s2393_s21, 1  ;;  %p160_p8 = scmp.lt.s32.totalorder %s2393_s21, 3 }
   0xc   : > { %p2224_p9 = scmp.eq.s32.totalorder %s2451_s22, 0  ;;  %s177_s7 = sshll.u32 %s2857_s3, 4  ;;  %s178_s7 = int_to_ptr.hbm [resolvable:$true] %s177_s7 }
   0xd   : > { %p161_p10 = pnand %p1764_p7, %p160_p8  ;;  %s2395_s8 = smov [#allocation2]  }
   0xe   : > { %s179_s9 = sshll.u32 %s2395_s8, 4  ;;  %s2396_s10 = smov 64   ;;  %s180_s9 = int_to_ptr.vmem [resolvable:$true] %s179_s9 }
   0xf   : > { %p2216_p11 = pneg %p161_p10  ;;  %s2397_s11 = smov 4  }
  0x10   : > { %207 = sbr.rel (%p161_p10) target bundleno = 908 (0x38c), region = 40 }
  0x11   : > { %p2217_p12 = pnand %p2224_p9, %p2216_p11 }
  0x13   : > { %2219 = dma.hbm_to_vmem [thread:$0]  (!%p2217_p12), %s178_s7, 8192, %s180_s9, [#allocation3], %s2396_s10, %s2396_s10, %s2397_s11  }
  0x15   : > { %2372 = dma.done.wait (%p2224_p9), [#allocation3], 8192  }
  0x16   : > { %2374 = vsyncadd (%p2224_p9), [#allocation3], 4294959104  ;;  %s1770_s12 = sshll.u32 %s2451_s22, 3  ;;  %v1806_v0 = vld [vmem:[%s2855_s1 + $0x48] sm:$0xf]  ;;  %vm286_vm0 = vcmask 261120  }
  0x17   : > { %p237_p13 = scmp.lt.s32.totalorder %s1770_s12, 15  ;;  %v2152_v1 = vld [vmem:[%s2855_s1 + $0x64] sm:$0xf0]  ;;  %v2151_v2 = vld [vmem:[%s2855_s1 + $0x4c] sm:$0xf]  ;;  %v2160_v30 = vld [vmem:[#allocation2 + $0xb8] sm:$0xff] }
  0x18   : > { %v1807_v3 = vor.u32 %v2152_v1, %v1806_v0  ;;  %v1808_v4 = vld [vmem:[%s2855_s1 + $0x68] sm:$0xf0]  ;;  %v1782_v5 = vld [vmem:[%s2855_s1 + $0x40] sm:$0xf]  ;;  %v2131_v9 = vld [vmem:[%s2855_s1 + $0x44] sm:$0xf] }
  0x19   : > { %s2867_s12 = smov (!%p237_p13, %s1770_s12), 15  ;;  %v2132_v6 = vld [vmem:[%s2855_s1 + $0x5c] sm:$0xf0]  ;;  %v1811_v7 = vor.u32 %v2151_v2, %v1808_v4  ;;  %v1784_v10 = vld [vmem:[%s2855_s1 + $0x60] sm:$0xf0]  ;;  %v2168_v31 = vld [vmem:[#allocation2 + $0xf8] sm:$0xff] }
  0x1a   : > { %s1771_s13 = sshll.u32 %s2867_s12, 3  ;;  %v1783_v8 = vor.u32 %v2132_v6, %v1782_v5  ;;  %v1798_v11 = vld [vmem:[%s2855_s1 + $0x8] sm:$0xf]  ;;  %449 = vmatpush.bf16.msra.mxu2 %v1807_v3  ;;  %v1787_v12 = vor.u32 %v2131_v9, %v1784_v10  ;;  %v2149_v14 = vld [vmem:[%s2855_s1 + $0xc] sm:$0xf]  ;;  %v2159_v32 = vld [vmem:[#allocation2 + $0xb0] sm:$0xff] }
  0x1b   : > { %s2510_s12 = scalar_lea.vmem %s2854_s0, %s1771_s13  ;;  %v2150_v13 = vld [vmem:[%s2855_s1 + $0x24] sm:$0xf0]  ;;  %v1800_v15 = vld [vmem:[%s2855_s1 + $0x28] sm:$0xf0]  ;;  %478 = vmatpush.bf16.msra.mxu3 %v1811_v7  ;;  %v1774_v18 = vld [vmem:[%s2855_s1] sm:$0xf] }
  0x1c   : > { %305 = vmatpush.bf16.msra.mxu0 %v1783_v8  ;;  %v1799_v16 = vor.u32 %v2150_v13, %v1798_v11  ;;  %v1803_v17 = vor.u32 %v2149_v14, %v1800_v15  ;;  %v2130_v19 = vld [vmem:[%s2855_s1 + $0x1c] sm:$0xf0]  ;;  %334 = vmatpush.bf16.msra.mxu1 %v1787_v12  ;;  %v245_v22 = vld [vmem:[%s2510_s12 + $0x8] sm:$0xff]  ;;  %v2129_v23 = vld [vmem:[%s2855_s1 + $0x4] sm:$0xf]  ;;  %s233_s11 = sand.u32 1, %s2385_s19  }
  0x1d   : > { %v244_v20 = vld [vmem:[%s2510_s12] sm:$0xff]  ;;  %v1775_v21 = vor.u32 %v2130_v19, %v1774_v18  ;;  %v246_v27 = vld [vmem:[%s2510_s12 + $0x10] sm:$0xff]  ;;  %v247_v28 = vld [vmem:[%s2510_s12 + $0x18] sm:$0xff]  ;;  %s1769_s14 = sshll.u32 %s233_s11, 6  ;;  %s2209_s16 = sshll.u32 %s2451_s22, 6 }
  0x1e   : > { %v1776_v24 = vld [vmem:[%s2855_s1 + $0x20] sm:$0xf0]  ;;  %v2544_v25 = vpack.c.bf16 %v245_v22, %v244_v20  ;;  %450 = vmatpush.bf16.msra.mxu2 %v1799_v16  ;;  %v2556_v29 = vpack.c.bf16 %v247_v28, %v246_v27  ;;  %v2167_v33 = vld [vmem:[#allocation2 + $0xf0] sm:$0xff]  ;;  %v2140_v34 = vld [vmem:[#allocation2 + $0x38] sm:$0xff]  ;;  %s2803_s15 = scalar_lea.vmem [#allocation5], %s1769_s14  ;;  %s1674_s13 = scalar_lea.sflag [#allocation4], %s233_s11 }
  0x1f   : > { %v1779_v26 = vor.u32 %v2129_v23, %v1776_v24  ;;  %479 = vmatpush.bf16.msra.mxu3 %v1803_v17  ;;  %v2148_v35 = vld [vmem:[#allocation2 + $0x78] sm:$0xff]  ;;  %v2139_v36 = vld [vmem:[#allocation2 + $0x30] sm:$0xff]  ;;  %v2158_v38 = vld [vmem:[#allocation2 + $0xa8] sm:$0xff]  ;;  %s1686_s25 = sshll.u32 %s2803_s15, 4  ;;  %s2347_s8 = scalar_lea.hbm %s2859_s5, 128  ;;  %s1687_s25 = int_to_ptr.vmem [resolvable:$true] %s1686_s25 }
  0x20   : > { %306 = vmatpush.bf16.msra.mxu0 %v1775_v21  ;;  %v2147_v37 = vld [vmem:[#allocation2 + $0x70] sm:$0xff]  ;;  %v2166_v39 = vld [vmem:[#allocation2 + $0xe8] sm:$0xff]  ;;  %v248_v40 = vld [vmem:[%s2510_s12 + $0x20] sm:$0xff] }
  0x21   : > { %335 = vmatpush.bf16.msra.mxu1 %v1779_v26  ;;  %1812 = vmatmul.msk.bf16.vlgmr.msra.gmra.mxu2 %vm286_vm0, %v2544_v25  ;;  %v249_v41 = vld [vmem:[%s2510_s12 + $0x28] sm:$0xff]  ;;  %v2157_v45 = vld [vmem:[#allocation2 + $0xa0] sm:$0xff]  ;;  %v2156_v49 = vld [vmem:[#allocation2 + $0x98] sm:$0xff] }
  0x22   : > { %1816 = vmatmul.msk.bf16.vlgmr.msra.gmra.mxu3 %vm286_vm0, %v2544_v25  ;;  %807 = vmatpush.bf16.msrb.mxu2 %v2140_v34  ;;  %v2138_v42 = vld [vmem:[#allocation2 + $0x28] sm:$0xff]  ;;  %v2568_v44 = vpack.c.bf16 %v249_v41, %v248_v40  ;;  %v2137_v46 = vld [vmem:[#allocation2 + $0x20] sm:$0xff]  ;;  %v2164_v50 = vld [vmem:[#allocation2 + $0xd8] sm:$0xff] }
  0x23   : > { %1788 = vmatmul.msk.bf16.vlgmr.msra.gmra.mxu0 %vm286_vm0, %v2544_v25  ;;  %836 = vmatpush.bf16.msrb.mxu3 %v2148_v35  ;;  %v2146_v43 = vld [vmem:[#allocation2 + $0x68] sm:$0xff]  ;;  %v2165_v47 = vld [vmem:[#allocation2 + $0xe0] sm:$0xff]  ;;  %v2155_v51 = vld [vmem:[#allocation2 + $0x90] sm:$0xff] }
  0x24   : > { %1792 = vmatmul.msk.bf16.vlgmr.msra.gmra.mxu1 %vm286_vm0, %v2544_v25  ;;  %653 = vmatpush.bf16.msrb.mxu0 %v2160_v30  ;;  %v2145_v48 = vld [vmem:[#allocation2 + $0x60] sm:$0xff]  ;;  %v2163_v52 = vld [vmem:[#allocation2 + $0xd0] sm:$0xff]  ;;  %v251_v54 = vld [vmem:[%s2510_s12 + $0x38] sm:$0xff] }
  0x25   : > { %682 = vmatpush.bf16.msrb.mxu1 %v2168_v31  ;;  %v250_v53 = vld [vmem:[%s2510_s12 + $0x30] sm:$0xff]  ;;  %v2136_v56 = vld [vmem:[#allocation2 + $0x18] sm:$0xff]  ;;  %v2154_v58 = vld [vmem:[#allocation2 + $0x88] sm:$0xff]  ;;  %s1685_s12 = scalar_lea.hbm %s2859_s5, %s2209_s16 }
  0x26   : > { %808 = vmatpush.bf16.msrb.mxu2 %v2139_v36  ;;  %v2580_v55 = vpack.c.bf16 %v251_v54, %v250_v53  ;;  %v2144_v57 = vld [vmem:[#allocation2 + $0x58] sm:$0xff]  ;;  %v2162_v59 = vld [vmem:[#allocation2 + $0xc8] sm:$0xff]  ;;  %v2135_v60 = vld [vmem:[#allocation2 + $0x10] sm:$0xff]  ;;  %s1688_s22 = sshll.u32 %s1685_s12, 4  ;;  %s1689_s22 = int_to_ptr.hbm [resolvable:$true] %s1688_s22 }
  0x27   : > { %837 = vmatpush.bf16.msrb.mxu3 %v2147_v37  ;;  %v2143_v61 = vld [vmem:[#allocation2 + $0x50] sm:$0xff]  ;;  %v2134_v62 = vld [vmem:[#allocation2 + $0x8] sm:$0xff]  ;;  %v2153_v0 = vld [vmem:[#allocation2 + $0x80] sm:$0xff]  ;;  %s2341_s26 = sshra.s32 %s1689_s22, 4  ;;  %s2342_s26 = int_to_ptr.hbm [resolvable:$true] %s2341_s26 }
  0x28   : > { %654 = vmatpush.bf16.msrb.mxu0 %v2159_v32  ;;  %v2142_v63 = vld [vmem:[#allocation2 + $0x48] sm:$0xff]  ;;  %v2161_v1 = vld [vmem:[#allocation2 + $0xc0] sm:$0xff]  ;;  %v1958_v4 = vld [vmem:[%s2855_s1 + $0x50] sm:$0xf]  ;;  %s2343_s30 = scalar_lea.hbm %s2342_s26, 64  ;;  %p2348_p3 = scmp.lt.s32.totalorder %s2342_s26, %s2859_s5 }
  0x29   : > { %683 = vmatpush.bf16.msrb.mxu1 %v2167_v33  ;;  %v2133_v2 = vld [vmem:[#allocation2] sm:$0xff]  ;;  %v2172_v5 = vld [vmem:[%s2855_s1 + $0x6c] sm:$0xf0]  ;;  %v2171_v6 = vld [vmem:[%s2855_s1 + $0x54] sm:$0xf]  ;;  %p2344_p0 = scmp.ne.s32.totalorder %s2342_s26, %s2343_s30  ;;  %p2349_p4 = scmp.lt.s32.totalorder %s2347_s8, %s2343_s30 }
  0x2a   : > { %809 = vmatpush.bf16.msrb.mxu2 %v2138_v42  ;;  %v2141_v3 = vld [vmem:[#allocation2 + $0x40] sm:$0xff]  ;;  %v1959_v7 = vor.u32 %v2172_v5, %v1958_v4  ;;  %v1960_v8 = vld [vmem:[%s2855_s1 + $0x70] sm:$0xf0] }
  0x2b   : > { %838 = vmatpush.bf16.msrb.mxu3 %v2146_v43  ;;  %v1963_v9 = vor.u32 %v2171_v6, %v1960_v8  ;;  %v260_v10 = vld [vmem:[%s2856_s2] sm:$0x3]  ;;  %v417_v16 = vld [vmem:[%s2856_s2 + $0x2] sm:$0x3]  ;;  %v2169_v53 = vld [vmem:[%s2855_s1 + $0x14] sm:$0xf]  ;;  %p2345_p1 = pnand %p2344_p0, %p2468_p5  ;;  %p2350_p7 = por %p2349_p4, %p2348_p3 }
  0x2c   : > { %655 = vmatpush.bf16.msrb.mxu0 %v2158_v38  ;;  %v2605_v12 = vperm.slane %v260_v10, 0  ;;  %v2607_v14 = vperm.slane %v260_v10, 1  ;;  %v2614_v20 = vperm.slane %v417_v16, 0  ;;  %v2616_v23 = vperm.slane %v417_v16, 1 }
  0x2d   : > { %684 = vmatpush.bf16.msrb.mxu1 %v2166_v39  ;;  %p2346_p2 = pneg %p2345_p1 }
  0x2e   : > { %810 = vmatpush.bf16.msrb.mxu2 %v2137_v46 }
  0x2f   : > { %839 = vmatpush.bf16.msrb.mxu3 %v2145_v48  ;;  %p2351_p8 = pnand %p2350_p7, %p2346_p2 }
  0x30   : > { %656 = vmatpush.bf16.msrb.mxu0 %v2157_v45 }
  0x31   : > { %1813 = vmatmul.msk.bf16.gmra.mxu2 %vm286_vm0, %v2556_v29  ;;  %685 = vmatpush.bf16.msrb.mxu1 %v2165_v47 }
  0x32   : > { %1817 = vmatmul.msk.bf16.gmra.mxu3 %vm286_vm0, %v2556_v29  ;;  %811 = vmatpush.bf16.msrb.mxu2 %v2136_v56 }
  0x33   : > { %1789 = vmatmul.msk.bf16.gmra.mxu0 %vm286_vm0, %v2556_v29  ;;  %840 = vmatpush.bf16.msrb.mxu3 %v2144_v57 }
  0x34   : > { %1793 = vmatmul.msk.bf16.gmra.mxu1 %vm286_vm0, %v2556_v29  ;;  %657 = vmatpush.bf16.msrb.mxu0 %v2156_v49 }
  0x35   : > { %686 = vmatpush.bf16.msrb.mxu1 %v2164_v50 }
  0x36   : > { %812 = vmatpush.bf16.msrb.mxu2 %v2135_v60 }
  0x37   : > { %841 = vmatpush.bf16.msrb.mxu3 %v2143_v61 }
  0x38   : > { %658 = vmatpush.bf16.msrb.mxu0 %v2155_v51  ;;  %v1950_v51 = vld [vmem:[%s2855_s1 + $0x10] sm:$0xf] }
  0x39   : > { %687 = vmatpush.bf16.msrb.mxu1 %v2163_v52  ;;  %v2170_v52 = vld [vmem:[%s2855_s1 + $0x2c] sm:$0xf0] }
  0x3a   : > { %813 = vmatpush.bf16.msrb.mxu2 %v2134_v62  ;;  %v1951_v57 = vor.u32 %v2170_v52, %v1950_v51 }
  0x3b   : > { %842 = vmatpush.bf16.msrb.mxu3 %v2142_v63 }
  0x3c   : > { %659 = vmatpush.bf16.msrb.mxu0 %v2154_v58  ;;  %v1952_v58 = vld [vmem:[%s2855_s1 + $0x30] sm:$0xf0] }
  0x3d   : > { %688 = vmatpush.bf16.msrb.mxu1 %v2162_v59  ;;  %v1955_v59 = vor.u32 %v2169_v53, %v1952_v58  ;;  %v2046_v58 = vld [vmem:[%s2855_s1 + $0x58] sm:$0xf] }
  0x3e   : > { %814 = vmatpush.bf16.msrb.mxu2 %v2133_v2 }
  0x3f   : > { %843 = vmatpush.bf16.msrb.mxu3 %v2141_v3 }
  0x40   : > { %660 = vmatpush.bf16.msrb.mxu0 %v2153_v0 }
  0x41   : > { %1814 = vmatmul.msk.bf16.gmra.mxu2 %vm286_vm0, %v2568_v44  ;;  %689 = vmatpush.bf16.msrb.mxu1 %v2161_v1 }
  0x42   : > { %1818 = vmatmul.msk.bf16.gmra.mxu3 %vm286_vm0, %v2568_v44 }
  0x43   : > { %1790 = vmatmul.msk.bf16.gmra.mxu0 %vm286_vm0, %v2568_v44 }
  0x44   : > { %1794 = vmatmul.msk.bf16.gmra.mxu1 %vm286_vm0, %v2568_v44  ;;  %901 = vmatpush.bf16.msra.mxu0 %v1959_v7 }
  0x45   : > { %930 = vmatpush.bf16.msra.mxu1 %v1963_v9 }
  0x48   : > { %902 = vmatpush.bf16.msra.mxu0 %v1951_v57 }
  0x49   : > { %931 = vmatpush.bf16.msra.mxu1 %v1955_v59  ;;  %v2192_v59 = vld [vmem:[%s2855_s1 + $0x74] sm:$0xf0] }
  0x51   : > { %1815 = vmatmul.msk.bf16.gmra.mxu2 %vm286_vm0, %v2580_v55 }
  0x52   : > { %1819 = vmatmul.msk.bf16.gmra.mxu3 %vm286_vm0, %v2580_v55 }
  0x53   : > { %1791 = vmatmul.msk.bf16.gmra.mxu0 %vm286_vm0, %v2580_v55 }
  0x54   : > { %1795 = vmatmul.msk.bf16.gmra.mxu1 %vm286_vm0, %v2580_v55 }
  0xa0   : > { %v308_v11 = vpop.f32.mrf.mxu0 }
  0xa1   : > { %v337_v13 = vpop.f32.mrf.mxu1  ;;  %v309_v15 = vadd.f32 %v308_v11, %v2605_v12 }
  0xa2   : > { %v338_v18 = vadd.f32 %v337_v13, %v2607_v14 }
  0xa3   : > { %v357_v22 = vmax.f32 %v309_v15, 0.0 }
  0xa4   : > { %v452_v17 = vpop.f32.mrf.mxu2  ;;  %v358_v27 = vmax.f32 %v338_v18, 0.0 }
  0xa5   : > { %v481_v19 = vpop.f32.mrf.mxu3  ;;  %v453_v31 = vadd.f32 %v452_v17, %v2614_v20 }
  0xa6   : > { %v482_v33 = vadd.f32 %v481_v19, %v2616_v23 }
  0xa7   : > { %v501_v40 = vmax.f32 %v453_v31, 0.0 }
  0xa8   : > { %v310_v21 = vpop.f32.mrf.mxu0  ;;  %v502_v43 = vmax.f32 %v482_v33, 0.0 }
  0xa9   : > { %v311_v24 = vadd.f32 %v310_v21, %v2605_v12  ;;  %v339_v26 = vpop.f32.mrf.mxu1 }
  0xaa   : > { %v340_v28 = vadd.f32 %v339_v26, %v2607_v14 }
  0xab   : > { %v359_v30 = vmax.f32 %v311_v24, 0.0 }
  0xac   : > { %v360_v32 = vmax.f32 %v340_v28, 0.0  ;;  %v454_v34 = vpop.f32.mrf.mxu2 }
  0xad   : > { %v373_v35 = vpack.c.bf16 %v359_v30, %v357_v22  ;;  %v455_v36 = vadd.f32 %v454_v34, %v2614_v20  ;;  %v483_v37 = vpop.f32.mrf.mxu3 }
  0xae   : > { %v374_v38 = vpack.c.bf16 %v360_v32, %v358_v27  ;;  %v484_v39 = vadd.f32 %v483_v37, %v2616_v23 }
  0xaf   : > { %815 = vmatmul.bf16.vlgmr.msrb.gmra.mxu2 %v373_v35  ;;  %v503_v41 = vmax.f32 %v455_v36, 0.0 }
  0xb0   : > { %v313_v42 = vpop.f32.mrf.mxu0  ;;  %844 = vmatmul.bf16.vlgmr.msrb.gmra.mxu3 %v374_v38  ;;  %v504_v45 = vmax.f32 %v484_v39, 0.0 }
  0xb1   : > { %v342_v46 = vpop.f32.mrf.mxu1  ;;  %v517_v47 = vpack.c.bf16 %v503_v41, %v501_v40  ;;  %v314_v49 = vadd.f32 %v313_v42, %v2605_v12 }
  0xb2   : > { %v518_v48 = vpack.c.bf16 %v504_v45, %v502_v43  ;;  %v343_v54 = vadd.f32 %v342_v46, %v2607_v14 }
  0xb3   : > { %661 = vmatmul.bf16.vlgmr.msrb.gmra.mxu0 %v517_v47  ;;  %v361_v61 = vmax.f32 %v314_v49, 0.0 }
  0xb4   : > { %690 = vmatmul.bf16.vlgmr.msrb.gmra.mxu1 %v518_v48  ;;  %v457_v50 = vpop.f32.mrf.mxu2  ;;  %v362_v0 = vmax.f32 %v343_v54, 0.0 }
  0xb5   : > { %v486_v56 = vpop.f32.mrf.mxu3  ;;  %v458_v3 = vadd.f32 %v457_v50, %v2614_v20 }
  0xb6   : > { %v487_v5 = vadd.f32 %v486_v56, %v2616_v23 }
  0xb7   : > { %v505_v13 = vmax.f32 %v458_v3, 0.0 }
  0xb8   : > { %v315_v60 = vpop.f32.mrf.mxu0  ;;  %v506_v17 = vmax.f32 %v487_v5, 0.0 }
  0xb9   : > { %v316_v62 = vadd.f32 %v315_v60, %v2605_v12  ;;  %v344_v63 = vpop.f32.mrf.mxu1  ;;  %v2191_v60 = vld [vmem:[%s2855_s1 + $0x5c] sm:$0xf] }
  0xba   : > { %v345_v1 = vadd.f32 %v344_v63, %v2607_v14  ;;  %v2047_v63 = vor.u32 %v2192_v59, %v2046_v58 }
  0xbb   : > { %v363_v2 = vmax.f32 %v316_v62, 0.0 }
  0xbc   : > { %v364_v4 = vmax.f32 %v345_v1, 0.0  ;;  %v459_v6 = vpop.f32.mrf.mxu2  ;;  %1207 = vmatpush.bf16.msrb.mxu0 %v2047_v63 }
  0xbd   : > { %v375_v7 = vpack.c.bf16 %v363_v2, %v361_v61  ;;  %v460_v8 = vadd.f32 %v459_v6, %v2614_v20  ;;  %v488_v9 = vpop.f32.mrf.mxu3 }
  0xbe   : > { %v376_v10 = vpack.c.bf16 %v364_v4, %v362_v0  ;;  %v489_v11 = vadd.f32 %v488_v9, %v2616_v23  ;;  %v2048_v0 = vld [vmem:[%s2855_s1 + $0x78] sm:$0xf0] }
  0xbf   : > { %820 = vmatmul.bf16.gmra.mxu2 %v375_v7  ;;  %v507_v15 = vmax.f32 %v460_v8, 0.0  ;;  %v2051_v1 = vor.u32 %v2191_v60, %v2048_v0  ;;  %v2175_v0 = vld [vmem:[#allocation2 + $0x110] sm:$0xff] }
  0xc0   : > { %v318_v16 = vpop.f32.mrf.mxu0  ;;  %849 = vmatmul.bf16.gmra.mxu3 %v376_v10  ;;  %v508_v18 = vmax.f32 %v489_v11, 0.0 }
  0xc1   : > { %v347_v19 = vpop.f32.mrf.mxu1  ;;  %v519_v21 = vpack.c.bf16 %v507_v15, %v505_v13  ;;  %v319_v24 = vadd.f32 %v318_v16, %v2605_v12  ;;  %1236 = vmatpush.bf16.msrb.mxu1 %v2051_v1  ;;  %v2183_v1 = vld [vmem:[#allocation2 + $0x150] sm:$0xff] }
  0xc2   : > { %v520_v22 = vpack.c.bf16 %v508_v18, %v506_v17  ;;  %v348_v27 = vadd.f32 %v347_v19, %v2607_v14 }
  0xc3   : > { %666 = vmatmul.bf16.gmra.mxu0 %v519_v21  ;;  %v365_v31 = vmax.f32 %v319_v24, 0.0 }
  0xc4   : > { %695 = vmatmul.bf16.gmra.mxu1 %v520_v22  ;;  %v462_v26 = vpop.f32.mrf.mxu2  ;;  %v366_v34 = vmax.f32 %v348_v27, 0.0  ;;  %v2189_v27 = vld [vmem:[%s2855_s1 + $0x1c] sm:$0xf] }
  0xc5   : > { %v491_v28 = vpop.f32.mrf.mxu3  ;;  %v463_v37 = vadd.f32 %v462_v26, %v2614_v20 }
  0xc6   : > { %v492_v39 = vadd.f32 %v491_v28, %v2616_v23 }
  0xc7   : > { %v509_v47 = vmax.f32 %v463_v37, 0.0  ;;  %v2186_v37 = vld [vmem:[#allocation2 + $0x168] sm:$0xff] }
  0xc8   : > { %v320_v30 = vpop.f32.mrf.mxu0  ;;  %v510_v50 = vmax.f32 %v492_v39, 0.0 }
  0xc9   : > { %v321_v32 = vadd.f32 %v320_v30, %v2605_v12  ;;  %v349_v33 = vpop.f32.mrf.mxu1  ;;  %v2040_v30 = vld [vmem:[%s2855_s1 + $0x38] sm:$0xf0] }
  0xca   : > { %v350_v35 = vadd.f32 %v349_v33, %v2607_v14  ;;  %v2188_v33 = vld [vmem:[#allocation2 + $0x178] sm:$0xff] }
  0xcb   : > { %v367_v36 = vmax.f32 %v321_v32, 0.0  ;;  %v2180_v32 = vld [vmem:[#allocation2 + $0x138] sm:$0xff]  ;;  %1134 = vmatpush.bf16.msra.mxu3 %v2188_v33 }
  0xcc   : > { %v368_v38 = vmax.f32 %v350_v35, 0.0  ;;  %v464_v40 = vpop.f32.mrf.mxu2  ;;  %1105 = vmatpush.bf16.msra.mxu2 %v2180_v32  ;;  %v2187_v35 = vld [vmem:[#allocation2 + $0x170] sm:$0xff] }
  0xcd   : > { %v377_v41 = vpack.c.bf16 %v367_v36, %v365_v31  ;;  %v465_v42 = vadd.f32 %v464_v40, %v2614_v20  ;;  %v493_v43 = vpop.f32.mrf.mxu3  ;;  %v2043_v31 = vor.u32 %v2189_v27, %v2040_v30  ;;  %v2178_v36 = vld [vmem:[#allocation2 + $0x128] sm:$0xff]  ;;  %v2208_v30 = vld [vmem:[#allocation2 + $0x1f8] sm:$0xff] }
  0xce   : > { %v378_v45 = vpack.c.bf16 %v368_v38, %v366_v34  ;;  %v494_v46 = vadd.f32 %v493_v43, %v2616_v23  ;;  %v2179_v34 = vld [vmem:[#allocation2 + $0x130] sm:$0xff] }
  0xcf   : > { %825 = vmatmul.bf16.gmra.mxu2 %v377_v41  ;;  %v511_v48 = vmax.f32 %v465_v42, 0.0  ;;  %1237 = vmatpush.bf16.msrb.mxu1 %v2043_v31 }
  0xd0   : > { %v323_v49 = vpop.f32.mrf.mxu0  ;;  %854 = vmatmul.bf16.gmra.mxu3 %v378_v45  ;;  %v512_v51 = vmax.f32 %v494_v46, 0.0  ;;  %1106 = vmatpush.bf16.msra.mxu2 %v2179_v34  ;;  %v2177_v46 = vld [vmem:[#allocation2 + $0x120] sm:$0xff] }
  0xd1   : > { %v352_v52 = vpop.f32.mrf.mxu1  ;;  %v521_v53 = vpack.c.bf16 %v511_v48, %v509_v47  ;;  %v324_v56 = vadd.f32 %v323_v49, %v2605_v12  ;;  %1135 = vmatpush.bf16.msra.mxu3 %v2187_v35  ;;  %v2185_v47 = vld [vmem:[#allocation2 + $0x160] sm:$0xff]  ;;  %v2199_v35 = vld [vmem:[#allocation2 + $0x1b0] sm:$0xff] }
  0xd2   : > { %v522_v54 = vpack.c.bf16 %v512_v51, %v510_v50  ;;  %v353_v61 = vadd.f32 %v352_v52, %v2607_v14 }
  0xd3   : > { %671 = vmatmul.bf16.gmra.mxu0 %v521_v53  ;;  %v369_v3 = vmax.f32 %v324_v56, 0.0  ;;  %v2176_v56 = vld [vmem:[#allocation2 + $0x118] sm:$0xff] }
  0xd4   : > { %700 = vmatmul.bf16.gmra.mxu1 %v522_v54  ;;  %v467_v57 = vpop.f32.mrf.mxu2  ;;  %v370_v6 = vmax.f32 %v353_v61, 0.0  ;;  %1107 = vmatpush.bf16.msra.mxu2 %v2178_v36  ;;  %v2207_v36 = vld [vmem:[#allocation2 + $0x1f0] sm:$0xff] }
  0xd5   : > { %v496_v62 = vpop.f32.mrf.mxu3  ;;  %v468_v9 = vadd.f32 %v467_v57, %v2614_v20  ;;  %1136 = vmatpush.bf16.msra.mxu3 %v2186_v37  ;;  %v2184_v57 = vld [vmem:[#allocation2 + $0x158] sm:$0xff] }
  0xd6   : > { %v497_v11 = vadd.f32 %v496_v62, %v2616_v23 }
  0xd8   : > { %v325_v2 = vpop.f32.mrf.mxu0  ;;  %v514_v22 = vmax.f32 %v497_v11, 0.0  ;;  %1108 = vmatpush.bf16.msra.mxu2 %v2177_v46  ;;  %v2206_v46 = vld [vmem:[#allocation2 + $0x1e8] sm:$0xff] }
  0xd9   : > { %v326_v4 = vadd.f32 %v325_v2, %v2605_v12  ;;  %v354_v5 = vpop.f32.mrf.mxu1  ;;  %v513_v12 = vmax.f32 %v468_v9, 0.0  ;;  %1137 = vmatpush.bf16.msra.mxu3 %v2185_v47  ;;  %v2174_v9 = vld [vmem:[#allocation2 + $0x108] sm:$0xff] }
  0xda   : > { %v355_v7 = vadd.f32 %v354_v5, %v2607_v14 }
  0xdb   : > { %v371_v8 = vmax.f32 %v326_v4, 0.0 }
  0xdc   : > { %v372_v10 = vmax.f32 %v355_v7, 0.0  ;;  %v469_v13 = vpop.f32.mrf.mxu2  ;;  %1109 = vmatpush.bf16.msra.mxu2 %v2176_v56 }
  0xdd   : > { %v379_v15 = vpack.c.bf16 %v371_v8, %v369_v3  ;;  %v470_v16 = vadd.f32 %v469_v13, %v2614_v20  ;;  %v498_v17 = vpop.f32.mrf.mxu3  ;;  %v2038_v20 = vld [vmem:[%s2855_s1 + $0x18] sm:$0xf]  ;;  %1138 = vmatpush.bf16.msra.mxu3 %v2184_v57 }
  0xde   : > { %v380_v18 = vpack.c.bf16 %v372_v10, %v370_v6  ;;  %v499_v19 = vadd.f32 %v498_v17, %v2616_v23  ;;  %v2190_v23 = vld [vmem:[%s2855_s1 + $0x34] sm:$0xf0]  ;;  %v2182_v10 = vld [vmem:[#allocation2 + $0x148] sm:$0xff] }
  0xdf   : > { %830 = vmatmul.bf16.gmra.mxu2 %v379_v15  ;;  %v515_v21 = vmax.f32 %v470_v16, 0.0  ;;  %v2039_v28 = vor.u32 %v2190_v23, %v2038_v20 }
  0xe0   : > { %859 = vmatmul.bf16.gmra.mxu3 %v380_v18  ;;  %v516_v14 = vmax.f32 %v499_v19, 0.0  ;;  %1110 = vmatpush.bf16.msra.mxu2 %v2175_v0  ;;  %v2173_v18 = vld [vmem:[#allocation2 + $0x100] sm:$0xff] }
  0xe1   : > { %v523_v24 = vpack.c.bf16 %v515_v21, %v513_v12  ;;  %1208 = vmatpush.bf16.msrb.mxu0 %v2039_v28  ;;  %1139 = vmatpush.bf16.msra.mxu3 %v2183_v1  ;;  %v2181_v19 = vld [vmem:[#allocation2 + $0x140] sm:$0xff]  ;;  %v2200_v28 = vld [vmem:[#allocation2 + $0x1b8] sm:$0xff] }
  0xe2   : > { %v524_v26 = vpack.c.bf16 %v516_v14, %v514_v22 }
  0xe3   : > { %676 = vmatmul.bf16.gmra.mxu0 %v523_v24 }
  0xe4   : > { %705 = vmatmul.bf16.gmra.mxu1 %v524_v26  ;;  %1111 = vmatpush.bf16.msra.mxu2 %v2174_v9 }
  0xe5   : > { %1140 = vmatpush.bf16.msra.mxu3 %v2182_v10 }
  0xe8   : > { %1112 = vmatpush.bf16.msra.mxu2 %v2173_v18 }
  0xe9   : > { %1141 = vmatpush.bf16.msra.mxu3 %v2181_v19 }
  0xec   : > { %1411 = vmatpush.bf16.msrb.mxu2 %v2200_v28 }
  0xed   : > { %1440 = vmatpush.bf16.msrb.mxu3 %v2208_v30 }
  0xf0   : > { %1412 = vmatpush.bf16.msrb.mxu2 %v2199_v35 }
  0xf1   : > { %1441 = vmatpush.bf16.msrb.mxu3 %v2207_v36 }
  0xf3   : > { %1964 = vmatmul.msk.bf16.vlgmr.msra.gmra.mxu0 %vm286_vm0, %v2544_v25 }
  0xf4   : > { %1968 = vmatmul.msk.bf16.vlgmr.msra.gmra.mxu1 %vm286_vm0, %v2544_v25 }
  0xf5   : > { %1442 = vmatpush.bf16.msrb.mxu3 %v2206_v46 }
 0x103   : > { %1965 = vmatmul.msk.bf16.gmra.mxu0 %vm286_vm0, %v2556_v29 }
 0x104   : > { %1969 = vmatmul.msk.bf16.gmra.mxu1 %vm286_vm0, %v2556_v29 }
 0x113   : > { %1966 = vmatmul.msk.bf16.gmra.mxu0 %vm286_vm0, %v2568_v44 }
 0x114   : > { %1970 = vmatmul.msk.bf16.gmra.mxu1 %vm286_vm0, %v2568_v44 }
 0x123   : > { %1967 = vmatmul.msk.bf16.gmra.mxu0 %vm286_vm0, %v2580_v55 }
 0x124   : > { %1971 = vmatmul.msk.bf16.gmra.mxu1 %vm286_vm0, %v2580_v55 }
 0x130   : > { %v662_v38 = vpop.f32.mrf.mxu0 }
 0x131   : > { %v691_v39 = vpop.f32.mrf.mxu1 }
 0x132   : > { %v816_v40 = vpop.f32.mrf.mxu2  ;;  %v692_v41 = vadd.f32 %v691_v39, %v662_v38 }
 0x133   : > { %v845_v42 = vpop.f32.mrf.mxu3  ;;  %2052 = vmatmul.msk.bf16.vlgmr.msrb.gmra.mxu0 %vm286_vm0, %v2544_v25 }
 0x134   : > { %v817_v43 = vadd.f32 %v816_v40, %v692_v41  ;;  %2056 = vmatmul.msk.bf16.vlgmr.msrb.gmra.mxu1 %vm286_vm0, %v2544_v25  ;;  %v869_v41 = vld [vmem:[%s2856_s2 + $0x4] sm:$0x3] }
 0x136   : > { %v2704_v45 = vadd.f32 %v845_v42, %v817_v43  ;;  %v2198_v43 = vld [vmem:[#allocation2 + $0x1a8] sm:$0xff] }
 0x137   : > { %1413 = vmatpush.bf16.msrb.mxu2 %v2198_v43 }
 0x138   : > { %v664_v48 = vpop.f32.mrf.mxu0 }
 0x139   : > { %v693_v49 = vpop.f32.mrf.mxu1 }
 0x13a   : > { %v818_v50 = vpop.f32.mrf.mxu2  ;;  %v694_v51 = vadd.f32 %v693_v49, %v664_v48  ;;  %v2737_v48 = vperm.slane %v869_v41, 1  ;;  %v2197_v49 = vld [vmem:[#allocation2 + $0x1a0] sm:$0xff] }
 0x13b   : > { %v847_v52 = vpop.f32.mrf.mxu3  ;;  %1414 = vmatpush.bf16.msrb.mxu2 %v2197_v49 }
 0x13c   : > { %v819_v53 = vadd.f32 %v818_v50, %v694_v51  ;;  %v2205_v50 = vld [vmem:[#allocation2 + $0x1e0] sm:$0xff] }
 0x13d   : > { %1443 = vmatpush.bf16.msrb.mxu3 %v2205_v50 }
 0x13e   : > { %v2706_v54 = vadd.f32 %v847_v52, %v819_v53 }
 0x140   : > { %v667_v58 = vpop.f32.mrf.mxu0 }
 0x141   : > { %v696_v25 = vpop.f32.mrf.mxu1 }
 0x142   : > { %v821_v59 = vpop.f32.mrf.mxu2  ;;  %v697_v60 = vadd.f32 %v696_v25, %v667_v58 }
 0x143   : > { %v850_v61 = vpop.f32.mrf.mxu3  ;;  %2053 = vmatmul.msk.bf16.gmra.mxu0 %vm286_vm0, %v2556_v29 }
 0x144   : > { %v822_v62 = vadd.f32 %v821_v59, %v697_v60  ;;  %2057 = vmatmul.msk.bf16.gmra.mxu1 %vm286_vm0, %v2556_v29 }
 0x146   : > { %v2712_v63 = vadd.f32 %v850_v61, %v822_v62 }
 0x148   : > { %v669_v2 = vpop.f32.mrf.mxu0 }
 0x149   : > { %v698_v3 = vpop.f32.mrf.mxu1 }
 0x14a   : > { %v823_v4 = vpop.f32.mrf.mxu2  ;;  %v699_v5 = vadd.f32 %v698_v3, %v669_v2  ;;  %v2196_v2 = vld [vmem:[#allocation2 + $0x198] sm:$0xff] }
 0x14b   : > { %v852_v6 = vpop.f32.mrf.mxu3  ;;  %v2204_v3 = vld [vmem:[#allocation2 + $0x1d8] sm:$0xff]  ;;  %1415 = vmatpush.bf16.msrb.mxu2 %v2196_v2 }
 0x14c   : > { %v824_v7 = vadd.f32 %v823_v4, %v699_v5  ;;  %1444 = vmatpush.bf16.msrb.mxu3 %v2204_v3  ;;  %v2195_v5 = vld [vmem:[#allocation2 + $0x190] sm:$0xff] }
 0x14e   : > { %v2714_v8 = vadd.f32 %v852_v6, %v824_v7  ;;  %v2203_v6 = vld [vmem:[#allocation2 + $0x1d0] sm:$0xff] }
 0x14f   : > { %1416 = vmatpush.bf16.msrb.mxu2 %v2195_v5 }
 0x150   : > { %v672_v11 = vpop.f32.mrf.mxu0  ;;  %1445 = vmatpush.bf16.msrb.mxu3 %v2203_v6 }
 0x151   : > { %v701_v29 = vpop.f32.mrf.mxu1 }
 0x152   : > { %v826_v13 = vpop.f32.mrf.mxu2  ;;  %v702_v15 = vadd.f32 %v701_v29, %v672_v11 }
 0x153   : > { %v855_v16 = vpop.f32.mrf.mxu3  ;;  %2054 = vmatmul.msk.bf16.gmra.mxu0 %vm286_vm0, %v2568_v44 }
 0x154   : > { %v827_v17 = vadd.f32 %v826_v13, %v702_v15  ;;  %2058 = vmatmul.msk.bf16.gmra.mxu1 %vm286_vm0, %v2568_v44 }
 0x156   : > { %v2720_v12 = vadd.f32 %v855_v16, %v827_v17 }
 0x158   : > { %v674_v21 = vpop.f32.mrf.mxu0 }
 0x159   : > { %v703_v22 = vpop.f32.mrf.mxu1 }
 0x15a   : > { %v828_v14 = vpop.f32.mrf.mxu2  ;;  %v704_v24 = vadd.f32 %v703_v22, %v674_v21 }
 0x15b   : > { %v857_v26 = vpop.f32.mrf.mxu3 }
 0x15c   : > { %v829_v20 = vadd.f32 %v828_v14, %v704_v24  ;;  %v2194_v14 = vld [vmem:[#allocation2 + $0x188] sm:$0xff] }
 0x15d   : > { %v2202_v24 = vld [vmem:[#allocation2 + $0x1c8] sm:$0xff]  ;;  %1417 = vmatpush.bf16.msrb.mxu2 %v2194_v14 }
 0x15e   : > { %v2722_v23 = vadd.f32 %v857_v26, %v829_v20  ;;  %1446 = vmatpush.bf16.msrb.mxu3 %v2202_v24  ;;  %v2193_v20 = vld [vmem:[#allocation2 + $0x180] sm:$0xff] }
 0x160   : > { %v677_v27 = vpop.f32.mrf.mxu0 }
 0x161   : > { %v706_v31 = vpop.f32.mrf.mxu1  ;;  %1418 = vmatpush.bf16.msrb.mxu2 %v2193_v20 }
 0x162   : > { %v831_v32 = vpop.f32.mrf.mxu2  ;;  %v707_v44 = vadd.f32 %v706_v31, %v677_v27  ;;  %v2201_v27 = vld [vmem:[#allocation2 + $0x1c0] sm:$0xff] }
 0x163   : > { %2055 = vmatmul.msk.bf16.gmra.mxu0 %vm286_vm0, %v2580_v55  ;;  %v860_v33 = vpop.f32.mrf.mxu3  ;;  %1447 = vmatpush.bf16.msrb.mxu3 %v2201_v27 }
 0x164   : > { %v832_v34 = vadd.f32 %v831_v32, %v707_v44  ;;  %2059 = vmatmul.msk.bf16.gmra.mxu1 %vm286_vm0, %v2580_v55  ;;  %v2735_v55 = vperm.slane %v869_v41, 0 }
 0x166   : > { %v2728_v37 = vadd.f32 %v860_v33, %v832_v34 }
 0x168   : > { %v679_v38 = vpop.f32.mrf.mxu0 }
 0x169   : > { %v708_v39 = vpop.f32.mrf.mxu1 }
 0x16a   : > { %v2730_v40 = vadd.f32 %v708_v39, %v679_v38 }
 0x170   : > { %v904_v42 = vpop.f32.mrf.mxu0 }
 0x171   : > { %v933_v47 = vpop.f32.mrf.mxu1  ;;  %v905_v51 = vadd.f32 %v904_v42, %v2735_v55 }
 0x172   : > { %v934_v52 = vadd.f32 %v933_v47, %v2737_v48 }
 0x173   : > { %v953_v25 = vmax.f32 %v905_v51, 0.0 }
 0x174   : > { %v954_v60 = vmax.f32 %v934_v52, 0.0 }
 0x178   : > { %v906_v53 = vpop.f32.mrf.mxu0 }
 0x179   : > { %v907_v56 = vadd.f32 %v906_v53, %v2735_v55  ;;  %v935_v57 = vpop.f32.mrf.mxu1 }
 0x17a   : > { %v936_v58 = vadd.f32 %v935_v57, %v2737_v48 }
 0x17b   : > { %v955_v59 = vmax.f32 %v907_v56, 0.0 }
 0x17c   : > { %v956_v61 = vmax.f32 %v936_v58, 0.0 }
 0x17d   : > { %v969_v62 = vpack.c.bf16 %v955_v59, %v953_v25 }
 0x17e   : > { %v970_v0 = vpack.c.bf16 %v956_v61, %v954_v60  ;;  %v1175_v60 = vld [vmem:[%s2856_s2 + $0x6] sm:$0x3] }
 0x17f   : > { %1113 = vmatmul.bf16.vlgmr.msra.gmra.mxu2 %v969_v62 }
 0x180   : > { %1142 = vmatmul.bf16.vlgmr.msra.gmra.mxu3 %v970_v0  ;;  %v909_v1 = vpop.f32.mrf.mxu0  ;;  %v1177_v0 = vperm.slane %v1175_v60, 0 }
 0x181   : > { %v938_v4 = vpop.f32.mrf.mxu1  ;;  %v910_v7 = vadd.f32 %v909_v1, %v2735_v55  ;;  %v1178_v1 = vperm.slane %v1175_v60, 1 }
 0x182   : > { %v939_v9 = vadd.f32 %v938_v4, %v2737_v48 }
 0x183   : > { %v957_v15 = vmax.f32 %v910_v7, 0.0 }
 0x184   : > { %v958_v17 = vmax.f32 %v939_v9, 0.0 }
 0x188   : > { %v911_v10 = vpop.f32.mrf.mxu0 }
 0x189   : > { %v912_v11 = vadd.f32 %v911_v10, %v2735_v55  ;;  %v940_v29 = vpop.f32.mrf.mxu1 }
 0x18a   : > { %v941_v13 = vadd.f32 %v940_v29, %v2737_v48 }
 0x18b   : > { %v959_v16 = vmax.f32 %v912_v11, 0.0 }
 0x18c   : > { %v960_v18 = vmax.f32 %v941_v13, 0.0 }
 0x18d   : > { %v971_v19 = vpack.c.bf16 %v959_v16, %v957_v15 }
 0x18e   : > { %v972_v21 = vpack.c.bf16 %v960_v18, %v958_v17 }
 0x18f   : > { %1118 = vmatmul.bf16.gmra.mxu2 %v971_v19 }
 0x190   : > { %1147 = vmatmul.bf16.gmra.mxu3 %v972_v21  ;;  %v914_v22 = vpop.f32.mrf.mxu0 }
 0x191   : > { %v943_v26 = vpop.f32.mrf.mxu1  ;;  %v915_v28 = vadd.f32 %v914_v22, %v2735_v55 }
 0x192   : > { %v944_v30 = vadd.f32 %v943_v26, %v2737_v48 }
 0x193   : > { %v961_v34 = vmax.f32 %v915_v28, 0.0 }
 0x194   : > { %v962_v36 = vmax.f32 %v944_v30, 0.0 }
 0x198   : > { %v916_v31 = vpop.f32.mrf.mxu0 }
 0x199   : > { %v917_v32 = vadd.f32 %v916_v31, %v2735_v55  ;;  %v945_v44 = vpop.f32.mrf.mxu1 }
 0x19a   : > { %v946_v33 = vadd.f32 %v945_v44, %v2737_v48 }
 0x19b   : > { %v963_v35 = vmax.f32 %v917_v32, 0.0 }
 0x19c   : > { %v964_v38 = vmax.f32 %v946_v33, 0.0 }
 0x19d   : > { %v973_v39 = vpack.c.bf16 %v963_v35, %v961_v34 }
 0x19e   : > { %v974_v41 = vpack.c.bf16 %v964_v38, %v962_v36 }
 0x19f   : > { %1123 = vmatmul.bf16.gmra.mxu2 %v973_v39 }
 0x1a0   : > { %1152 = vmatmul.bf16.gmra.mxu3 %v974_v41  ;;  %v919_v42 = vpop.f32.mrf.mxu0 }
 0x1a1   : > { %v948_v43 = vpop.f32.mrf.mxu1  ;;  %v920_v46 = vadd.f32 %v919_v42, %v2735_v55 }
 0x1a2   : > { %v949_v47 = vadd.f32 %v948_v43, %v2737_v48 }
 0x1a3   : > { %v965_v53 = vmax.f32 %v920_v46, 0.0 }
 0x1a4   : > { %v966_v57 = vmax.f32 %v949_v47, 0.0 }
 0x1a8   : > { %v921_v49 = vpop.f32.mrf.mxu0 }
 0x1a9   : > { %v922_v50 = vadd.f32 %v921_v49, %v2735_v55  ;;  %v950_v51 = vpop.f32.mrf.mxu1 }
 0x1aa   : > { %v951_v52 = vadd.f32 %v950_v51, %v2737_v48 }
 0x1ab   : > { %v967_v56 = vmax.f32 %v922_v50, 0.0 }
 0x1ac   : > { %v968_v58 = vmax.f32 %v951_v52, 0.0 }
 0x1ad   : > { %v975_v25 = vpack.c.bf16 %v967_v56, %v965_v53 }
 0x1ae   : > { %v976_v59 = vpack.c.bf16 %v968_v58, %v966_v57 }
 0x1af   : > { %1128 = vmatmul.bf16.gmra.mxu2 %v975_v25 }
 0x1b0   : > { %1157 = vmatmul.bf16.gmra.mxu3 %v976_v59  ;;  %v1210_v61 = vpop.f32.mrf.mxu0 }
 0x1b1   : > { %v1239_v62 = vpop.f32.mrf.mxu1  ;;  %v1211_v55 = vadd.f32 %v1210_v61, %v1177_v0 }
 0x1b2   : > { %v1240_v2 = vadd.f32 %v1239_v62, %v1178_v1 }
 0x1b3   : > { %v1259_v6 = vmax.f32 %v1211_v55, 0.0  ;;  %v2758_v55 = vpop.f32.mrf.mxu2 }
 0x1b4   : > { %v1260_v9 = vmax.f32 %v1240_v2, 0.0  ;;  %v2760_v2 = vpop.f32.mrf.mxu3 }
 0x1b8   : > { %v1212_v3 = vpop.f32.mrf.mxu0 }
 0x1b9   : > { %v1213_v48 = vadd.f32 %v1212_v3, %v1177_v0  ;;  %v1241_v4 = vpop.f32.mrf.mxu1 }
 0x1ba   : > { %v1242_v5 = vadd.f32 %v1241_v4, %v1178_v1 }
 0x1bb   : > { %v1261_v7 = vmax.f32 %v1213_v48, 0.0 }
 0x1bc   : > { %v1262_v10 = vmax.f32 %v1242_v5, 0.0 }
 0x1bd   : > { %v1275_v11 = vpack.c.bf16 %v1261_v7, %v1259_v6 }
 0x1be   : > { %v1276_v29 = vpack.c.bf16 %v1262_v10, %v1260_v9 }
 0x1bf   : > { %1419 = vmatmul.bf16.vlgmr.msrb.gmra.mxu2 %v1275_v11 }
 0x1c0   : > { %1448 = vmatmul.bf16.vlgmr.msrb.gmra.mxu3 %v1276_v29  ;;  %v1215_v13 = vpop.f32.mrf.mxu0 }
 0x1c1   : > { %v1244_v15 = vpop.f32.mrf.mxu1  ;;  %v1216_v16 = vadd.f32 %v1215_v13, %v1177_v0 }
 0x1c2   : > { %v1245_v17 = vadd.f32 %v1244_v15, %v1178_v1 }
 0x1c3   : > { %v1263_v14 = vmax.f32 %v1216_v16, 0.0 }
 0x1c4   : > { %v1264_v26 = vmax.f32 %v1245_v17, 0.0 }
 0x1c8   : > { %v1217_v18 = vpop.f32.mrf.mxu0 }
 0x1c9   : > { %v1218_v19 = vadd.f32 %v1217_v18, %v1177_v0  ;;  %v1246_v21 = vpop.f32.mrf.mxu1 }
 0x1ca   : > { %v1247_v22 = vadd.f32 %v1246_v21, %v1178_v1 }
 0x1cb   : > { %v1265_v24 = vmax.f32 %v1218_v19, 0.0 }
 0x1cc   : > { %v1266_v20 = vmax.f32 %v1247_v22, 0.0 }
 0x1cd   : > { %v1277_v27 = vpack.c.bf16 %v1265_v24, %v1263_v14  ;;  %v2264_v24 = vld [vmem:[%s2858_s4] ss:$0 sm:$0xff] }
 0x1ce   : > { %v1278_v28 = vpack.c.bf16 %v1266_v20, %v1264_v26 }
 0x1cf   : > { %1424 = vmatmul.bf16.gmra.mxu2 %v1277_v27 }
 0x1d0   : > { %1453 = vmatmul.bf16.gmra.mxu3 %v1278_v28  ;;  %v1220_v30 = vpop.f32.mrf.mxu0 }
 0x1d1   : > { %v1249_v31 = vpop.f32.mrf.mxu1  ;;  %v1221_v32 = vadd.f32 %v1220_v30, %v1177_v0 }
 0x1d2   : > { %v1250_v44 = vadd.f32 %v1249_v31, %v1178_v1 }
 0x1d3   : > { %v1267_v38 = vmax.f32 %v1221_v32, 0.0 }
 0x1d4   : > { %v1268_v41 = vmax.f32 %v1250_v44, 0.0 }
 0x1d8   : > { %v1222_v33 = vpop.f32.mrf.mxu0 }
 0x1d9   : > { %v1223_v34 = vadd.f32 %v1222_v33, %v1177_v0  ;;  %v1251_v35 = vpop.f32.mrf.mxu1 }
 0x1da   : > { %v1252_v36 = vadd.f32 %v1251_v35, %v1178_v1 }
 0x1db   : > { %v1269_v39 = vmax.f32 %v1223_v34, 0.0 }
 0x1dc   : > { %v1270_v42 = vmax.f32 %v1252_v36, 0.0 }
 0x1dd   : > { %v1279_v43 = vpack.c.bf16 %v1269_v39, %v1267_v38 }
 0x1de   : > { %v1280_v46 = vpack.c.bf16 %v1270_v42, %v1268_v41 }
 0x1df   : > { %1429 = vmatmul.bf16.gmra.mxu2 %v1279_v43 }
 0x1e0   : > { %1458 = vmatmul.bf16.gmra.mxu3 %v1280_v46  ;;  %v1225_v47 = vpop.f32.mrf.mxu0 }
 0x1e1   : > { %v1254_v49 = vpop.f32.mrf.mxu1  ;;  %v1226_v50 = vadd.f32 %v1225_v47, %v1177_v0 }
 0x1e2   : > { %v1255_v51 = vadd.f32 %v1254_v49, %v1178_v1 }
 0x1e3   : > { %v1271_v58 = vmax.f32 %v1226_v50, 0.0 }
 0x1e4   : > { %v1272_v59 = vmax.f32 %v1255_v51, 0.0 }
 0x1e8   : > { %v1227_v52 = vpop.f32.mrf.mxu0 }
 0x1e9   : > { %v1228_v53 = vadd.f32 %v1227_v52, %v1177_v0  ;;  %v1256_v56 = vpop.f32.mrf.mxu1 }
 0x1ea   : > { %v1257_v57 = vadd.f32 %v1256_v56, %v1178_v1 }
 0x1eb   : > { %v1273_v25 = vmax.f32 %v1228_v53, 0.0 }
 0x1ec   : > { %v1274_v60 = vmax.f32 %v1257_v57, 0.0 }
 0x1ed   : > { %v1281_v61 = vpack.c.bf16 %v1273_v25, %v1271_v58 }
 0x1ee   : > { %v1282_v62 = vpack.c.bf16 %v1274_v60, %v1272_v59 }
 0x1ef   : > { %1434 = vmatmul.bf16.gmra.mxu2 %v1281_v61 }
 0x1f0   : > { %1463 = vmatmul.bf16.gmra.mxu3 %v1282_v62 }
 0x202   : > { %v1114_v3 = vpop.f32.mrf.mxu2 }
 0x203   : > { %v1143_v48 = vpop.f32.mrf.mxu3 }
 0x204   : > { %v1144_v18 = vadd.f32 %v1143_v48, %v1114_v3 }
 0x206   : > { %v1163_v22 = vadd.f32 %v1144_v18, %v2704_v45 }
 0x20a   : > { %v1116_v4 = vpop.f32.mrf.mxu2 }
 0x20b   : > { %v1145_v5 = vpop.f32.mrf.mxu3 }
 0x20c   : > { %v1146_v20 = vadd.f32 %v1145_v5, %v1116_v4 }
 0x20e   : > { %v1164_v31 = vadd.f32 %v1146_v20, %v2706_v54 }
 0x212   : > { %v1119_v6 = vpop.f32.mrf.mxu2 }
 0x213   : > { %v1148_v0 = vpop.f32.mrf.mxu3 }
 0x214   : > { %v1149_v33 = vadd.f32 %v1148_v0, %v1119_v6 }
 0x216   : > { %v1165_v36 = vadd.f32 %v1149_v33, %v2712_v63 }
 0x21a   : > { %v1121_v7 = vpop.f32.mrf.mxu2 }
 0x21b   : > { %v1150_v1 = vpop.f32.mrf.mxu3 }
 0x21c   : > { %v1151_v41 = vadd.f32 %v1150_v1, %v1121_v7 }
 0x21e   : > { %v1166_v47 = vadd.f32 %v1151_v41, %v2714_v8 }
 0x222   : > { %v1124_v9 = vpop.f32.mrf.mxu2 }
 0x223   : > { %v1153_v10 = vpop.f32.mrf.mxu3 }
 0x224   : > { %v1154_v50 = vadd.f32 %v1153_v10, %v1124_v9 }
 0x226   : > { %v1167_v56 = vadd.f32 %v1154_v50, %v2720_v12  ;;  %v834_v12 = vadd.f32 %v2758_v55, %v2730_v40 }
 0x228   : > { %v863_v10 = vadd.f32 %v2760_v2, %v834_v12 }
 0x22a   : > { %v1126_v11 = vpop.f32.mrf.mxu2 }
 0x22b   : > { %v1155_v29 = vpop.f32.mrf.mxu3 }
 0x22c   : > { %v1156_v58 = vadd.f32 %v1155_v29, %v1126_v11 }
 0x22e   : > { %v1168_v61 = vadd.f32 %v1156_v58, %v2722_v23 }
 0x232   : > { %v1129_v13 = vpop.f32.mrf.mxu2 }
 0x233   : > { %v1158_v15 = vpop.f32.mrf.mxu3 }
 0x234   : > { %v1159_v3 = vadd.f32 %v1158_v15, %v1129_v13 }
 0x236   : > { %v1169_v6 = vadd.f32 %v1159_v3, %v2728_v37 }
 0x23a   : > { %v1131_v16 = vpop.f32.mrf.mxu2 }
 0x23b   : > { %v1160_v17 = vpop.f32.mrf.mxu3 }
 0x23c   : > { %v1161_v1 = vadd.f32 %v1160_v17, %v1131_v16 }
 0x23e   : > { %v1170_v29 = vadd.f32 %v1161_v1, %v863_v10 }
 0x242   : > { %v1420_v19 = vpop.f32.mrf.mxu2 }
 0x243   : > { %v1449_v21 = vpop.f32.mrf.mxu3 }
 0x244   : > { %v1450_v14 = vadd.f32 %v1449_v21, %v1420_v19 }
 0x246   : > { %v1469_v26 = vadd.f32 %v1450_v14, %v1163_v22 }
 0x248   : > { %v1481_v27 = vadd.f32 %v2264_v24, %v1469_v26 }
 0x24a   : > { %1489 = vmax.xlane.f32.xlu0 %v1481_v27  ;;  %v1422_v28 = vpop.f32.mrf.mxu2 }
 0x24b   : > { %v1451_v30 = vpop.f32.mrf.mxu3 }
 0x24c   : > { %v1452_v32 = vadd.f32 %v1451_v30, %v1422_v28 }
 0x24e   : > { %v1470_v44 = vadd.f32 %v1452_v32, %v1164_v31 }
 0x250   : > { %v1482_v34 = vadd.f32 %v2264_v24, %v1470_v44 }
 0x252   : > { %1491 = vmax.xlane.f32.xlu0 %v1482_v34  ;;  %v1425_v35 = vpop.f32.mrf.mxu2 }
 0x253   : > { %v1454_v45 = vpop.f32.mrf.mxu3 }
 0x254   : > { %v1455_v38 = vadd.f32 %v1454_v45, %v1425_v35 }
 0x256   : > { %v1471_v39 = vadd.f32 %v1455_v38, %v1165_v36 }
 0x258   : > { %v1483_v42 = vadd.f32 %v2264_v24, %v1471_v39 }
 0x25a   : > { %1493 = vmax.xlane.f32.xlu1 %v1483_v42  ;;  %v1427_v43 = vpop.f32.mrf.mxu2 }
 0x25b   : > { %v1456_v46 = vpop.f32.mrf.mxu3 }
 0x25c   : > { %v1457_v49 = vadd.f32 %v1456_v46, %v1427_v43 }
 0x25e   : > { %v1472_v54 = vadd.f32 %v1457_v49, %v1166_v47 }
 0x260   : > { %v1484_v51 = vadd.f32 %v2264_v24, %v1472_v54 }
 0x262   : > { %1495 = vmax.xlane.f32.xlu1 %v1484_v51  ;;  %v1430_v52 = vpop.f32.mrf.mxu2 }
 0x263   : > { %v1459_v53 = vpop.f32.mrf.mxu3 }
 0x264   : > { %v1460_v57 = vadd.f32 %v1459_v53, %v1430_v52 }
 0x266   : > { %v1473_v63 = vadd.f32 %v1460_v57, %v1167_v56 }
 0x268   : > { %v1485_v25 = vadd.f32 %v2264_v24, %v1473_v63 }
 0x26a   : > { %1497 = vmax.xlane.f32.xlu2 %v1485_v25  ;;  %v1432_v59 = vpop.f32.mrf.mxu2 }
 0x26b   : > { %v1461_v60 = vpop.f32.mrf.mxu3 }
 0x26c   : > { %v1462_v62 = vadd.f32 %v1461_v60, %v1432_v59 }
 0x26e   : > { %v1474_v8 = vadd.f32 %v1462_v62, %v1168_v61 }
 0x270   : > { %v1486_v48 = vadd.f32 %v2264_v24, %v1474_v8 }
 0x272   : > { %1499 = vmax.xlane.f32.xlu2 %v1486_v48  ;;  %v1435_v4 = vpop.f32.mrf.mxu2 }
 0x273   : > { %v1464_v5 = vpop.f32.mrf.mxu3 }
 0x274   : > { %v1465_v0 = vadd.f32 %v1464_v5, %v1435_v4 }
 0x276   : > { %v1475_v7 = vadd.f32 %v1465_v0, %v1169_v6 }
 0x278   : > { %v1487_v9 = vadd.f32 %v2264_v24, %v1475_v7 }
 0x27a   : > { %1501 = vmax.xlane.f32.xlu0 %v1487_v9  ;;  %v1437_v23 = vpop.f32.mrf.mxu2 }
 0x27b   : > { %v1466_v11 = vpop.f32.mrf.mxu3 }
 0x27c   : > { %v1467_v13 = vadd.f32 %v1466_v11, %v1437_v23 }
 0x27e   : > { %v1476_v15 = vadd.f32 %v1467_v13, %v1170_v29 }
 0x280   : > { %v1488_v18 = vadd.f32 %v2264_v24, %v1476_v15 }
 0x282   : > { %1503 = vmax.xlane.f32.xlu1 %v1488_v18 }
 0x2bd   : > { %v1490_v19 = vpop.xlane.xlu0 %1489 }
 0x2be   : > { %v1505_v21 = vsub.f32 %v1481_v27, %v1490_v19 }
 0x2c0   : > { %v1513_v37 = vmul.f32 1.442695, %v1505_v21 }
 0x2c2   : > { %2265 = vpow2.f32 %v1513_v37 }
 0x2c5   : > { %v1492_v22 = vpop.xlane.xlu0 %1491 }
 0x2c6   : > { %v1506_v14 = vsub.f32 %v1482_v34, %v1492_v22 }
 0x2c8   : > { %v2775_v40 = vpop.eup %2265  ;;  %v1515_v55 = vmul.f32 1.442695, %v1506_v14 }
 0x2c9   : > { %1529 = vadd.xlane.f32.xlu2 %v2775_v40 }
 0x2ca   : > { %2267 = vpow2.f32 %v1515_v55 }
 0x2cd   : > { %v1494_v2 = vpop.xlane.xlu1 %1493 }
 0x2ce   : > { %v1507_v16 = vsub.f32 %v1483_v42, %v1494_v2 }
 0x2d0   : > { %v2778_v17 = vpop.eup %2267  ;;  %v1517_v26 = vmul.f32 1.442695, %v1507_v16 }
 0x2d1   : > { %1531 = vadd.xlane.f32.xlu0 %v2778_v17 }
 0x2d2   : > { %2269 = vpow2.f32 %v1517_v26 }
 0x2d5   : > { %v1496_v24 = vpop.xlane.xlu1 %1495 }
 0x2d6   : > { %v1508_v20 = vsub.f32 %v1484_v51, %v1496_v24 }
 0x2d8   : > { %v2781_v27 = vpop.eup %2269  ;;  %v1519_v28 = vmul.f32 1.442695, %v1508_v20 }
 0x2d9   : > { %1533 = vadd.xlane.f32.xlu1 %v2781_v27 }
 0x2da   : > { %2271 = vpow2.f32 %v1519_v28 }
 0x2dd   : > { %v1498_v30 = vpop.xlane.xlu2 %1497 }
 0x2de   : > { %v1509_v31 = vsub.f32 %v1485_v25, %v1498_v30 }
 0x2e0   : > { %v2784_v32 = vpop.eup %2271  ;;  %v1521_v44 = vmul.f32 1.442695, %v1509_v31 }
 0x2e1   : > { %1535 = vadd.xlane.f32.xlu2 %v2784_v32 }
 0x2e2   : > { %2273 = vpow2.f32 %v1521_v44 }
 0x2e5   : > { %v1500_v33 = vpop.xlane.xlu2 %1499 }
 0x2e6   : > { %v1510_v34 = vsub.f32 %v1486_v48, %v1500_v33 }
 0x2e8   : > { %v2787_v35 = vpop.eup %2273  ;;  %v1523_v45 = vmul.f32 1.442695, %v1510_v34 }
 0x2e9   : > { %1537 = vadd.xlane.f32.xlu0 %v2787_v35 }
 0x2ea   : > { %2275 = vpow2.f32 %v1523_v45 }
 0x2ed   : > { %v1502_v36 = vpop.xlane.xlu0 %1501 }
 0x2ee   : > { %v1511_v38 = vsub.f32 %v1487_v9, %v1502_v36 }
 0x2f0   : > { %v2790_v39 = vpop.eup %2275  ;;  %v1525_v41 = vmul.f32 1.442695, %v1511_v38 }
 0x2f1   : > { %1539 = vadd.xlane.f32.xlu1 %v2790_v39 }
 0x2f2   : > { %2277 = vpow2.f32 %v1525_v41 }
 0x2f5   : > { %v1504_v42 = vpop.xlane.xlu1 %1503 }
 0x2f6   : > { %v1512_v43 = vsub.f32 %v1488_v18, %v1504_v42 }
 0x2f8   : > { %v2793_v46 = vpop.eup %2277  ;;  %v1527_v47 = vmul.f32 1.442695, %v1512_v43 }
 0x2f9   : > { %1541 = vadd.xlane.f32.xlu2 %v2793_v46 }
 0x2fa   : > { %2279 = vpow2.f32 %v1527_v47 }
 0x300   : > { %v2796_v49 = vpop.eup %2279 }
 0x301   : > { %1543 = vadd.xlane.f32.xlu0 %v2796_v49 }
 0x33c   : > { %v1530_v54 = vpop.xlane.xlu2 %1529 }
 0x33d   : > { %2281 = vrcp.f32 %v1530_v54  ;;  %v1556_v56 = vand.u32 2147483648, %v1530_v54  ;;  %v1554_v63 = vand.u32 2147483647, %v1530_v54  ;;  %vm1550_vm2 = vweird.f32 %v1530_v54 }
 0x33f   : > { %v1557_v59 = vor.u32 1.1754944e-38, %v1556_v56  ;;  %vm1555_vm4 = vcmp.eq.f32.partialorder %v1554_v63, 8.507059e+37 }
 0x343   : > { %v2282_v50 = vpop.eup %2281 }
 0x344   : > { %v1546_v51 = vmul.f32 %v2282_v50, %v1530_v54  ;;  %v1532_v52 = vpop.xlane.xlu0 %1531  ;;  %vm1551_vm1 = vweird.f32 %v2282_v50 }
 0x345   : > { %2283 = vrcp.f32 %v1532_v52  ;;  %vm1552_vm3 = vmor %vm1550_vm2, %vm1551_vm1  ;;  %v1571_v4 = vand.u32 2147483648, %v1532_v52  ;;  %v1569_v6 = vand.u32 2147483647, %v1532_v52  ;;  %vm1565_vm6 = vweird.f32 %v1532_v52 }
 0x346   : > { %v1547_v53 = vsub.f32 1.0, %v1546_v51 }
 0x347   : > { %v1572_v7 = vor.u32 1.1754944e-38, %v1571_v4  ;;  %vm1570_vm8 = vcmp.eq.f32.partialorder %v1569_v6, 8.507059e+37 }
 0x348   : > { %v1548_v57 = vmul.f32 %v2282_v50, %v1547_v53 }
 0x34a   : > { %v1549_v58 = vadd.f32 %v2282_v50, %v1548_v57 }
 0x34b   : > { %v2284_v25 = vpop.eup %2283 }
 0x34c   : > { %v1553_v60 = vsel %vm1552_vm3, %v2282_v50, %v1549_v58  ;;  %v1561_v61 = vmul.f32 %v2284_v25, %v1532_v52  ;;  %v1534_v62 = vpop.xlane.xlu1 %1533  ;;  %vm1566_vm5 = vweird.f32 %v2284_v25 }
 0x34d   : > { %v1558_v8 = vsel %vm1555_vm4, %v1557_v59, %v1553_v60  ;;  %2285 = vrcp.f32 %v1534_v62  ;;  %vm1567_vm7 = vmor %vm1565_vm6, %vm1566_vm5  ;;  %v1586_v13 = vand.u32 2147483648, %v1534_v62  ;;  %v1584_v18 = vand.u32 2147483647, %v1534_v62 }
 0x34e   : > { %v1559_v3 = vmul.f32 %v2775_v40, %v1558_v8  ;;  %v1562_v48 = vsub.f32 1.0, %v1561_v61  ;;  %vm1580_vm10 = vweird.f32 %v1534_v62 }
 0x34f   : > { %v1587_v37 = vor.u32 1.1754944e-38, %v1586_v13  ;;  %vm1585_vm12 = vcmp.eq.f32.partialorder %v1584_v18, 8.507059e+37 }
 0x350   : > { %1665 = vst [vmem:[%s2803_s15] sm:$0xff] %v1559_v3  ;;  %v1563_v5 = vmul.f32 %v2284_v25, %v1562_v48 }
 0x352   : > { %v1564_v0 = vadd.f32 %v2284_v25, %v1563_v5 }
 0x353   : > { %v2286_v12 = vpop.eup %2285 }
 0x354   : > { %v1568_v1 = vsel %vm1567_vm7, %v2284_v25, %v1564_v0  ;;  %v1576_v9 = vmul.f32 %v2286_v12, %v1534_v62  ;;  %v1536_v10 = vpop.xlane.xlu2 %1535  ;;  %vm1581_vm9 = vweird.f32 %v2286_v12 }
 0x355   : > { %v1573_v23 = vsel %vm1570_vm8, %v1572_v7, %v1568_v1  ;;  %2287 = vrcp.f32 %v1536_v10  ;;  %vm1582_vm11 = vmor %vm1580_vm10, %vm1581_vm9  ;;  %v1599_v24 = vand.u32 2147483647, %v1536_v10  ;;  %vm1595_vm14 = vweird.f32 %v1536_v10 }
 0x356   : > { %v1574_v11 = vmul.f32 %v2778_v17, %v1573_v23  ;;  %v1577_v29 = vsub.f32 1.0, %v1576_v9  ;;  %v1601_v17 = vand.u32 2147483648, %v1536_v10 }
 0x357   : > { %vm1600_vm0 = vcmp.eq.f32.partialorder %v1599_v24, 8.507059e+37 }
 0x358   : > { %1666 = vst [vmem:[%s2803_s15 + $0x8] sm:$0xff] %v1574_v11  ;;  %v1578_v15 = vmul.f32 %v2286_v12, %v1577_v29  ;;  %v1602_v30 = vor.u32 1.1754944e-38, %v1601_v17 }
 0x35a   : > { %v1579_v19 = vadd.f32 %v2286_v12, %v1578_v15 }
 0x35b   : > { %v2288_v21 = vpop.eup %2287 }
 0x35c   : > { %v1583_v22 = vsel %vm1582_vm11, %v2286_v12, %v1579_v19  ;;  %v1591_v14 = vmul.f32 %v2288_v21, %v1536_v10  ;;  %v1538_v40 = vpop.xlane.xlu0 %1537  ;;  %vm1596_vm13 = vweird.f32 %v2288_v21 }
 0x35d   : > { %v1588_v55 = vsel %vm1585_vm12, %v1587_v37, %v1583_v22  ;;  %2289 = vrcp.f32 %v1538_v40  ;;  %vm1597_vm15 = vmor %vm1595_vm14, %vm1596_vm13  ;;  %v1616_v36 = vand.u32 2147483648, %v1538_v40  ;;  %v1614_v41 = vand.u32 2147483647, %v1538_v40 }
 0x35e   : > { %v1589_v2 = vmul.f32 %v2781_v27, %v1588_v55  ;;  %v1592_v16 = vsub.f32 1.0, %v1591_v14  ;;  %vm1610_vm2 = vweird.f32 %v1538_v40 }
 0x35f   : > { %v1617_v47 = vor.u32 1.1754944e-38, %v1616_v36  ;;  %vm1615_vm4 = vcmp.eq.f32.partialorder %v1614_v41, 8.507059e+37 }
 0x360   : > { %1667 = vst [vmem:[%s2803_s15 + $0x10] sm:$0xff] %v1589_v2  ;;  %v1593_v26 = vmul.f32 %v2288_v21, %v1592_v16 }
 0x362   : > { %v1594_v20 = vadd.f32 %v2288_v21, %v1593_v26 }
 0x363   : > { %v2290_v28 = vpop.eup %2289 }
 0x364   : > { %v1598_v31 = vsel %vm1597_vm15, %v2288_v21, %v1594_v20  ;;  %v1606_v44 = vmul.f32 %v2290_v28, %v1538_v40  ;;  %v1540_v33 = vpop.xlane.xlu1 %1539  ;;  %vm1611_vm1 = vweird.f32 %v2290_v28 }
 0x365   : > { %v1603_v34 = vsel %vm1600_vm0, %v1602_v30, %v1598_v31  ;;  %2291 = vrcp.f32 %v1540_v33  ;;  %vm1612_vm3 = vmor %vm1610_vm2, %vm1611_vm1  ;;  %v1631_v56 = vand.u32 2147483648, %v1540_v33  ;;  %v1629_v63 = vand.u32 2147483647, %v1540_v33 }
 0x366   : > { %v1604_v27 = vmul.f32 %v2784_v32, %v1603_v34  ;;  %v1607_v45 = vsub.f32 1.0, %v1606_v44  ;;  %vm1625_vm6 = vweird.f32 %v1540_v33 }
 0x367   : > { %v1632_v59 = vor.u32 1.1754944e-38, %v1631_v56  ;;  %vm1630_vm8 = vcmp.eq.f32.partialorder %v1629_v63, 8.507059e+37 }
 0x368   : > { %1668 = vst [vmem:[%s2803_s15 + $0x18] sm:$0xff] %v1604_v27  ;;  %v1608_v38 = vmul.f32 %v2290_v28, %v1607_v45 }
 0x36a   : > { %v1609_v42 = vadd.f32 %v2290_v28, %v1608_v38 }
 0x36b   : > { %v2292_v43 = vpop.eup %2291 }
 0x36c   : > { %v1613_v54 = vsel %vm1612_vm3, %v2290_v28, %v1609_v42  ;;  %v1621_v50 = vmul.f32 %v2292_v43, %v1540_v33  ;;  %v1542_v51 = vpop.xlane.xlu2 %1541  ;;  %vm1626_vm5 = vweird.f32 %v2292_v43 }
 0x36d   : > { %v1618_v52 = vsel %vm1615_vm4, %v1617_v47, %v1613_v54  ;;  %2293 = vrcp.f32 %v1542_v51  ;;  %vm1627_vm7 = vmor %vm1625_vm6, %vm1626_vm5  ;;  %v1646_v48 = vand.u32 2147483648, %v1542_v51  ;;  %v1644_v5 = vand.u32 2147483647, %v1542_v51 }
 0x36e   : > { %v1619_v32 = vmul.f32 %v2787_v35, %v1618_v52  ;;  %v1622_v53 = vsub.f32 1.0, %v1621_v50  ;;  %vm1640_vm10 = vweird.f32 %v1542_v51 }
 0x36f   : > { %v1647_v12 = vor.u32 1.1754944e-38, %v1646_v48  ;;  %vm1645_vm12 = vcmp.eq.f32.partialorder %v1644_v5, 8.507059e+37 }
 0x370   : > { %1669 = vst [vmem:[%s2803_s15 + $0x20] sm:$0xff] %v1619_v32  ;;  %v1623_v57 = vmul.f32 %v2292_v43, %v1622_v53 }
 0x372   : > { %v1624_v58 = vadd.f32 %v2292_v43, %v1623_v57 }
 0x373   : > { %v2294_v25 = vpop.eup %2293 }
 0x374   : > { %v1628_v60 = vsel %vm1627_vm7, %v2292_v43, %v1624_v58  ;;  %v1636_v61 = vmul.f32 %v2294_v25, %v1542_v51  ;;  %v1544_v62 = vpop.xlane.xlu0 %1543  ;;  %vm1641_vm9 = vweird.f32 %v2294_v25 }
 0x375   : > { %v1633_v8 = vsel %vm1630_vm8, %v1632_v59, %v1628_v60  ;;  %2295 = vrcp.f32 %v1544_v62  ;;  %vm1642_vm11 = vmor %vm1640_vm10, %vm1641_vm9  ;;  %v1661_v23 = vand.u32 2147483648, %v1544_v62  ;;  %v1659_v29 = vand.u32 2147483647, %v1544_v62 }
 0x376   : > { %v1634_v35 = vmul.f32 %v2790_v39, %v1633_v8  ;;  %v1637_v3 = vsub.f32 1.0, %v1636_v61  ;;  %vm1655_vm14 = vweird.f32 %v1544_v62 }
 0x377   : > { %v1662_v15 = vor.u32 1.1754944e-38, %v1661_v23  ;;  %vm1660_vm0 = vcmp.eq.f32.partialorder %v1659_v29, 8.507059e+37 }
 0x378   : > { %1670 = vst [vmem:[%s2803_s15 + $0x28] sm:$0xff] %v1634_v35  ;;  %v1638_v4 = vmul.f32 %v2294_v25, %v1637_v3 }
 0x37a   : > { %v1639_v6 = vadd.f32 %v2294_v25, %v1638_v4 }
 0x37b   : > { %v2296_v0 = vpop.eup %2295 }
 0x37c   : > { %v1643_v7 = vsel %vm1642_vm11, %v2294_v25, %v1639_v6  ;;  %v1651_v1 = vmul.f32 %v2296_v0, %v1544_v62  ;;  %vm1656_vm13 = vweird.f32 %v2296_v0 }
 0x37d   : > { %v1648_v9 = vsel %vm1645_vm12, %v1647_v12, %v1643_v7  ;;  %vm1657_vm15 = vmor %vm1655_vm14, %vm1656_vm13 }
 0x37e   : > { %v1649_v39 = vmul.f32 %v2793_v46, %v1648_v9  ;;  %v1652_v10 = vsub.f32 1.0, %v1651_v1 }
 0x380   : > { %1671 = vst [vmem:[%s2803_s15 + $0x30] sm:$0xff] %v1649_v39  ;;  %v1653_v11 = vmul.f32 %v2296_v0, %v1652_v10 }
 0x382   : > { %v1654_v13 = vadd.f32 %v2296_v0, %v1653_v11 }
 0x384   : > { %v1658_v46 = vsel %vm1657_vm15, %v2296_v0, %v1654_v13 }
 0x385   : > { %v1663_v18 = vsel %vm1660_vm0, %v1662_v15, %v1658_v46 }
 0x386   : > { %v1664_v19 = vmul.f32 %v2796_v49, %v1663_v18 }
 0x388   : > { %1672 = vst [vmem:[%s2803_s15 + $0x38] sm:$0xff] %v1664_v19 }
 0x389   : > { %2354 = shalt.err (!%p2351_p8)
}
 0x38a   : > { %s2398_s11 = smov 128   ;;  %s2399_s14 = smov 8  }
 0x38b   : > { %2214 = dma.vmem_to_hbm [thread:$0]  (%p2468_p5), %s1687_s25, 1024, %s1689_s22, %s1674_s13, %s2398_s11, %s2398_s11, %s2399_s14  }
 0x38c PF: > { %p2226_p9 = scmp.ge.s32.totalorder %s2393_s21, 2  ;;  %s1703_s15 = sand.u32 1, %s2381_s18  }
 0x38d   : > { %s1704_s16 = scalar_lea.sflag [#allocation4], %s1703_s15 }
 0x38e   : > { %p2221_p10 = pnand %p2226_p9, %p2472_p6 }
 0x390   : > { %p2222_p11 = pneg %p2221_p10 }
 0x392   : > { %2376 = dma.done.wait (%p2222_p11), %s1704_s16, 1024  }
 0x393   : > { %2378 = vsyncadd (%p2222_p11), %s1704_s16, 4294966272  ;;  %p16_p12 = scmp.ge.s32.totalorder %s2455_s24, 4   ;;  %s2862_s18 = smov %s2385_s19 }
 0x394   : > { %s2863_s19 = smov %s2389_s20  ;;  %s2864_s20 = smov %s2466_s27 }
 0x395   : > { %s2865_s21 = smov %s2455_s24  ;;  %18 = sbr.rel (!%p16_p12) target bundleno = 4 (0x4), region = 80 }
 0x39a   :  { %1710 = vsyncpa [#allocation3], 1 }
 0x39b   :  { %1712 = vsyncpa [#allocation3 + $0x1], 1 }
 0x39c   :  { %1713 = vsyncpa [#allocation4], 1 }
 0x39d   :  { %1715 = vsyncpa [#allocation4 + $0x1], 1 }

</bundles_post_ra>
